<compile_context>
chip_gen: v5e
topology: v5e:2x2
jax: 0.10.0
libtpu: 0.0.40
codegen_flags: <defaults>
</compile_context>

<pallas_src>
import jax
import jax.numpy as jnp
from jax.experimental import pallas as pl
from jax.experimental.pallas import tpu as pltpu

OUTPUT_DIM = 12

# Layer sizes exactly as the PyTorch module computes them with output_dim=12
_D0 = OUTPUT_DIM                      # 12
_D1 = round(OUTPUT_DIM * 0.75)        # 9
_D2 = round(OUTPUT_DIM * 0.5)         # 6
_D3 = round(OUTPUT_DIM * 0.33)        # 4
_D4 = round(OUTPUT_DIM * 0.25)        # 3

# (in_features, out_features, apply_tanh_after) for the 8 Linear layers (enc then dec)
_LAYERS = [
    (_D0, _D1, True),   # enc Linear(12, 9) + Tanh
    (_D1, _D2, True),   # enc Linear(9, 6)  + Tanh
    (_D2, _D3, True),   # enc Linear(6, 4)  + Tanh
    (_D3, _D4, False),  # enc Linear(4, 3)
    (_D4, _D3, True),   # dec Linear(3, 4)  + Tanh
    (_D3, _D2, True),   # dec Linear(4, 6)  + Tanh
    (_D2, _D1, True),   # dec Linear(6, 9)  + Tanh
    (_D1, _D0, False),  # dec Linear(9, 12)
]

_MACS_PER_SAMPLE = sum(di * do for di, do, _ in _LAYERS)           # 396
_TANH_PER_SAMPLE = sum(do for _, do, t in _LAYERS if t)            # 38


def _round_up(x, m):
    return ((x + m - 1) // m) * m


def _autoencoder_kernel(xT_ref, *refs):
    """refs = (w1, b1, ..., w8, b8, outT_ref).

    xT_ref / outT_ref blocks: (12, TB) with the batch tile on the lane axis.
    w_i: (d_out, d_in)  (PyTorch layout);  b_i: (d_out, 1).
    """
    outT_ref = refs[-1]
    param_refs = refs[:-1]

    h = xT_ref[...]                        # (12, TB) f32, lane-dense on batch
    tb = h.shape[1]
    for li, (d_in, d_out, apply_tanh) in enumerate(_LAYERS):
        w = param_refs[2 * li][...]        # (d_out, d_in)
        b = param_refs[2 * li + 1][...]    # (d_out, 1)
        # Bias as accumulator init (lane broadcast), then an unrolled VPU
        # multiply-accumulate over the tiny contraction dim (d_in <= 12):
        #   acc[o, :] += w[o, i] * h[i, :]
        acc = jnp.broadcast_to(b, (d_out, tb))
        for i in range(d_in):
            acc = acc + w[:, i:i + 1] * h[i:i + 1, :]
        h = jnp.tanh(acc) if apply_tanh else acc
    outT_ref[...] = h.astype(outT_ref.dtype)


def init_params(key):
    """PyTorch-Linear-style uniform init; weights in (out, in) layout, bias (out, 1)."""
    params = []
    for (d_in, d_out, _) in _LAYERS:
        key, kw, kb = jax.random.split(key, 3)
        bound = 1.0 / jnp.sqrt(jnp.float32(d_in))
        w = jax.random.uniform(kw, (d_out, d_in), jnp.float32, -bound, bound)
        b = jax.random.uniform(kb, (d_out, 1), jnp.float32, -bound, bound)
        params.append(w)
        params.append(b)
    return params


def _reference_forward(x, params):
    """Pure-JAX reference (x: (B, 12))."""
    h = x
    for li, (_, _, apply_tanh) in enumerate(_LAYERS):
        w = params[2 * li]          # (d_out, d_in)
        b = params[2 * li + 1]      # (d_out, 1)
        h = h @ w.T + b[:, 0]
        if apply_tanh:
            h = jnp.tanh(h)
    return h


def autoencoder_forward(x, params, block_batch=4096):
    """x: (B, 12) f32 -> (B, 12) f32."""
    B = x.shape[0]
    # Lane-dense batch tile: multiple of 128, capped at block_batch.
    TB = min(block_batch, _round_up(max(B, 1), 128))
    padded_B = _round_up(B, TB)
    grid = (padded_B // TB,)

    # Transpose to (features, batch) in the wrapper; pad batch (lanes) to TB multiple.
    xT = jnp.transpose(x)                                   # (12, B)
    if padded_B != B:
        xT = jnp.pad(xT, ((0, 0), (0, padded_B - B)))

    x_spec = pl.BlockSpec((_D0, TB), lambda i: (0, i))
    out_spec = pl.BlockSpec((_D0, TB), lambda i: (0, i))
    # Constant index_map -> weights/biases stay VMEM-resident across grid steps.
    param_specs = [pl.BlockSpec(p.shape, lambda i: (0, 0)) for p in params]

    param_bytes = int(sum(p.size for p in params)) * 4
    cost = pl.CostEstimate(
        flops=2 * _MACS_PER_SAMPLE * padded_B,
        transcendentals=_TANH_PER_SAMPLE * padded_B,
        bytes_accessed=2 * _D0 * 4 * padded_B + param_bytes,
    )

    outT = pl.pallas_call(
        _autoencoder_kernel,
        out_shape=jax.ShapeDtypeStruct((_D0, padded_B), jnp.float32),
        grid=grid,
        in_specs=[x_spec] + param_specs,
        out_specs=out_spec,
        compiler_params=pltpu.CompilerParams(
            dimension_semantics=("parallel",),
        ),
        cost_estimate=cost,
    )(xT, *params)

    return jnp.transpose(outT[:, :B])


if __name__ == "__main__":
    key = jax.random.PRNGKey(0)
    key_x, key_p = jax.random.split(key)

    batch = 8
    x = jax.random.normal(key_x, (batch, OUTPUT_DIM), dtype=jnp.float32)
    params = init_params(key_p)

    out = autoencoder_forward(x, params)
    out = jax.block_until_ready(out)
    assert out.shape == (batch, OUTPUT_DIM), out.shape
    assert out.dtype == jnp.float32, out.dtype

    ref = _reference_forward(x, params)
    assert jnp.allclose(out, ref, atol=1e-3, rtol=1e-3), float(
        jnp.max(jnp.abs(out - ref))
    )
    print("KERNEL_OK")
</pallas_src>

<mosaic_0001>
module attributes {stable_mosaic.version = 11 : i64} {
  func.func @_autoencoder_kernel(%arg0: i32, %arg1: memref<12x128xf32, #tpu.memory_space<vmem>>, %arg2: memref<9x12xf32, #tpu.memory_space<vmem>>, %arg3: memref<9x1xf32, #tpu.memory_space<vmem>>, %arg4: memref<6x9xf32, #tpu.memory_space<vmem>>, %arg5: memref<6x1xf32, #tpu.memory_space<vmem>>, %arg6: memref<4x6xf32, #tpu.memory_space<vmem>>, %arg7: memref<4x1xf32, #tpu.memory_space<vmem>>, %arg8: memref<3x4xf32, #tpu.memory_space<vmem>>, %arg9: memref<3x1xf32, #tpu.memory_space<vmem>>, %arg10: memref<4x3xf32, #tpu.memory_space<vmem>>, %arg11: memref<4x1xf32, #tpu.memory_space<vmem>>, %arg12: memref<6x4xf32, #tpu.memory_space<vmem>>, %arg13: memref<6x1xf32, #tpu.memory_space<vmem>>, %arg14: memref<9x6xf32, #tpu.memory_space<vmem>>, %arg15: memref<9x1xf32, #tpu.memory_space<vmem>>, %arg16: memref<12x9xf32, #tpu.memory_space<vmem>>, %arg17: memref<12x1xf32, #tpu.memory_space<vmem>>, %arg18: memref<12x128xf32, #tpu.memory_space<vmem>>) attributes {dimension_semantics = [#tpu.dimension_semantics<parallel>], iteration_bounds = array<i64: 1>, scalar_prefetch = 0 : i64, scratch_operands = 0 : i64, tpu.core_type = #tpu.core_type<tc>, window_params = [{transform_indices = @transform_0, window_bounds = array<i64: 12, 128>}, {pipeline_mode = #tpu.pipeline_mode<synchronous>, transform_indices = @transform_1, window_bounds = array<i64: 9, 12>}, {pipeline_mode = #tpu.pipeline_mode<synchronous>, transform_indices = @transform_2, window_bounds = array<i64: 9, 1>}, {pipeline_mode = #tpu.pipeline_mode<synchronous>, transform_indices = @transform_3, window_bounds = array<i64: 6, 9>}, {pipeline_mode = #tpu.pipeline_mode<synchronous>, transform_indices = @transform_4, window_bounds = array<i64: 6, 1>}, {pipeline_mode = #tpu.pipeline_mode<synchronous>, transform_indices = @transform_5, window_bounds = array<i64: 4, 6>}, {pipeline_mode = #tpu.pipeline_mode<synchronous>, transform_indices = @transform_6, window_bounds = array<i64: 4, 1>}, {pipeline_mode = #tpu.pipeline_mode<synchronous>, transform_indices = @transform_7, window_bounds = array<i64: 3, 4>}, {pipeline_mode = #tpu.pipeline_mode<synchronous>, transform_indices = @transform_8, window_bounds = array<i64: 3, 1>}, {pipeline_mode = #tpu.pipeline_mode<synchronous>, transform_indices = @transform_9, window_bounds = array<i64: 4, 3>}, {pipeline_mode = #tpu.pipeline_mode<synchronous>, transform_indices = @transform_10, window_bounds = array<i64: 4, 1>}, {pipeline_mode = #tpu.pipeline_mode<synchronous>, transform_indices = @transform_11, window_bounds = array<i64: 6, 4>}, {pipeline_mode = #tpu.pipeline_mode<synchronous>, transform_indices = @transform_12, window_bounds = array<i64: 6, 1>}, {pipeline_mode = #tpu.pipeline_mode<synchronous>, transform_indices = @transform_13, window_bounds = array<i64: 9, 6>}, {pipeline_mode = #tpu.pipeline_mode<synchronous>, transform_indices = @transform_14, window_bounds = array<i64: 9, 1>}, {pipeline_mode = #tpu.pipeline_mode<synchronous>, transform_indices = @transform_15, window_bounds = array<i64: 12, 9>}, {pipeline_mode = #tpu.pipeline_mode<synchronous>, transform_indices = @transform_16, window_bounds = array<i64: 12, 1>}, {transform_indices = @transform_17, window_bounds = array<i64: 12, 128>}]} {
    %c0 = arith.constant 0 : index
    %c0_0 = arith.constant 0 : index
    %0 = vector.load %arg1[%c0, %c0_0] : memref<12x128xf32, #tpu.memory_space<vmem>>, vector<12x128xf32>
    %c0_1 = arith.constant 0 : index
    %c0_2 = arith.constant 0 : index
    %1 = vector.load %arg2[%c0_1, %c0_2] : memref<9x12xf32, #tpu.memory_space<vmem>>, vector<9x12xf32>
    %c0_3 = arith.constant 0 : index
    %c0_4 = arith.constant 0 : index
    %2 = vector.load %arg3[%c0_3, %c0_4] : memref<9x1xf32, #tpu.memory_space<vmem>>, vector<9x1xf32>
    %3 = vector.shape_cast %2 : vector<9x1xf32> to vector<9x1xf32>
    %4 = vector.broadcast %3 : vector<9x1xf32> to vector<9x128xf32>
    %5 = vector.extract_strided_slice %1 {offsets = [0, 0], sizes = [9, 1], strides = [1, 1]} : vector<9x12xf32> to vector<9x1xf32>
    %6 = vector.extract_strided_slice %0 {offsets = [0, 0], sizes = [1, 128], strides = [1, 1]} : vector<12x128xf32> to vector<1x128xf32>
    %7 = vector.broadcast %5 : vector<9x1xf32> to vector<9x128xf32>
    %8 = vector.broadcast %6 : vector<1x128xf32> to vector<9x128xf32>
    %9 = arith.mulf %7, %8 : vector<9x128xf32>
    %10 = arith.addf %4, %9 : vector<9x128xf32>
    %11 = vector.extract_strided_slice %1 {offsets = [0, 1], sizes = [9, 1], strides = [1, 1]} : vector<9x12xf32> to vector<9x1xf32>
    %12 = vector.extract_strided_slice %0 {offsets = [1, 0], sizes = [1, 128], strides = [1, 1]} : vector<12x128xf32> to vector<1x128xf32>
    %13 = vector.broadcast %11 : vector<9x1xf32> to vector<9x128xf32>
    %14 = vector.broadcast %12 : vector<1x128xf32> to vector<9x128xf32>
    %15 = arith.mulf %13, %14 : vector<9x128xf32>
    %16 = arith.addf %10, %15 : vector<9x128xf32>
    %17 = vector.extract_strided_slice %1 {offsets = [0, 2], sizes = [9, 1], strides = [1, 1]} : vector<9x12xf32> to vector<9x1xf32>
    %18 = vector.extract_strided_slice %0 {offsets = [2, 0], sizes = [1, 128], strides = [1, 1]} : vector<12x128xf32> to vector<1x128xf32>
    %19 = vector.broadcast %17 : vector<9x1xf32> to vector<9x128xf32>
    %20 = vector.broadcast %18 : vector<1x128xf32> to vector<9x128xf32>
    %21 = arith.mulf %19, %20 : vector<9x128xf32>
    %22 = arith.addf %16, %21 : vector<9x128xf32>
    %23 = vector.extract_strided_slice %1 {offsets = [0, 3], sizes = [9, 1], strides = [1, 1]} : vector<9x12xf32> to vector<9x1xf32>
    %24 = vector.extract_strided_slice %0 {offsets = [3, 0], sizes = [1, 128], strides = [1, 1]} : vector<12x128xf32> to vector<1x128xf32>
    %25 = vector.broadcast %23 : vector<9x1xf32> to vector<9x128xf32>
    %26 = vector.broadcast %24 : vector<1x128xf32> to vector<9x128xf32>
    %27 = arith.mulf %25, %26 : vector<9x128xf32>
    %28 = arith.addf %22, %27 : vector<9x128xf32>
    %29 = vector.extract_strided_slice %1 {offsets = [0, 4], sizes = [9, 1], strides = [1, 1]} : vector<9x12xf32> to vector<9x1xf32>
    %30 = vector.extract_strided_slice %0 {offsets = [4, 0], sizes = [1, 128], strides = [1, 1]} : vector<12x128xf32> to vector<1x128xf32>
    %31 = vector.broadcast %29 : vector<9x1xf32> to vector<9x128xf32>
    %32 = vector.broadcast %30 : vector<1x128xf32> to vector<9x128xf32>
    %33 = arith.mulf %31, %32 : vector<9x128xf32>
    %34 = arith.addf %28, %33 : vector<9x128xf32>
    %35 = vector.extract_strided_slice %1 {offsets = [0, 5], sizes = [9, 1], strides = [1, 1]} : vector<9x12xf32> to vector<9x1xf32>
    %36 = vector.extract_strided_slice %0 {offsets = [5, 0], sizes = [1, 128], strides = [1, 1]} : vector<12x128xf32> to vector<1x128xf32>
    %37 = vector.broadcast %35 : vector<9x1xf32> to vector<9x128xf32>
    %38 = vector.broadcast %36 : vector<1x128xf32> to vector<9x128xf32>
    %39 = arith.mulf %37, %38 : vector<9x128xf32>
    %40 = arith.addf %34, %39 : vector<9x128xf32>
    %41 = vector.extract_strided_slice %1 {offsets = [0, 6], sizes = [9, 1], strides = [1, 1]} : vector<9x12xf32> to vector<9x1xf32>
    %42 = vector.extract_strided_slice %0 {offsets = [6, 0], sizes = [1, 128], strides = [1, 1]} : vector<12x128xf32> to vector<1x128xf32>
    %43 = vector.broadcast %41 : vector<9x1xf32> to vector<9x128xf32>
    %44 = vector.broadcast %42 : vector<1x128xf32> to vector<9x128xf32>
    %45 = arith.mulf %43, %44 : vector<9x128xf32>
    %46 = arith.addf %40, %45 : vector<9x128xf32>
    %47 = vector.extract_strided_slice %1 {offsets = [0, 7], sizes = [9, 1], strides = [1, 1]} : vector<9x12xf32> to vector<9x1xf32>
    %48 = vector.extract_strided_slice %0 {offsets = [7, 0], sizes = [1, 128], strides = [1, 1]} : vector<12x128xf32> to vector<1x128xf32>
    %49 = vector.broadcast %47 : vector<9x1xf32> to vector<9x128xf32>
    %50 = vector.broadcast %48 : vector<1x128xf32> to vector<9x128xf32>
    %51 = arith.mulf %49, %50 : vector<9x128xf32>
    %52 = arith.addf %46, %51 : vector<9x128xf32>
    %53 = vector.extract_strided_slice %1 {offsets = [0, 8], sizes = [9, 1], strides = [1, 1]} : vector<9x12xf32> to vector<9x1xf32>
    %54 = vector.extract_strided_slice %0 {offsets = [8, 0], sizes = [1, 128], strides = [1, 1]} : vector<12x128xf32> to vector<1x128xf32>
    %55 = vector.broadcast %53 : vector<9x1xf32> to vector<9x128xf32>
    %56 = vector.broadcast %54 : vector<1x128xf32> to vector<9x128xf32>
    %57 = arith.mulf %55, %56 : vector<9x128xf32>
    %58 = arith.addf %52, %57 : vector<9x128xf32>
    %59 = vector.extract_strided_slice %1 {offsets = [0, 9], sizes = [9, 1], strides = [1, 1]} : vector<9x12xf32> to vector<9x1xf32>
    %60 = vector.extract_strided_slice %0 {offsets = [9, 0], sizes = [1, 128], strides = [1, 1]} : vector<12x128xf32> to vector<1x128xf32>
    %61 = vector.broadcast %59 : vector<9x1xf32> to vector<9x128xf32>
    %62 = vector.broadcast %60 : vector<1x128xf32> to vector<9x128xf32>
    %63 = arith.mulf %61, %62 : vector<9x128xf32>
    %64 = arith.addf %58, %63 : vector<9x128xf32>
    %65 = vector.extract_strided_slice %1 {offsets = [0, 10], sizes = [9, 1], strides = [1, 1]} : vector<9x12xf32> to vector<9x1xf32>
    %66 = vector.extract_strided_slice %0 {offsets = [10, 0], sizes = [1, 128], strides = [1, 1]} : vector<12x128xf32> to vector<1x128xf32>
    %67 = vector.broadcast %65 : vector<9x1xf32> to vector<9x128xf32>
    %68 = vector.broadcast %66 : vector<1x128xf32> to vector<9x128xf32>
    %69 = arith.mulf %67, %68 : vector<9x128xf32>
    %70 = arith.addf %64, %69 : vector<9x128xf32>
    %71 = vector.extract_strided_slice %1 {offsets = [0, 11], sizes = [9, 1], strides = [1, 1]} : vector<9x12xf32> to vector<9x1xf32>
    %72 = vector.extract_strided_slice %0 {offsets = [11, 0], sizes = [1, 128], strides = [1, 1]} : vector<12x128xf32> to vector<1x128xf32>
    %73 = vector.broadcast %71 : vector<9x1xf32> to vector<9x128xf32>
    %74 = vector.broadcast %72 : vector<1x128xf32> to vector<9x128xf32>
    %75 = arith.mulf %73, %74 : vector<9x128xf32>
    %76 = arith.addf %70, %75 : vector<9x128xf32>
    %77 = math.tanh %76 : vector<9x128xf32>
    %c0_5 = arith.constant 0 : index
    %c0_6 = arith.constant 0 : index
    %78 = vector.load %arg4[%c0_5, %c0_6] : memref<6x9xf32, #tpu.memory_space<vmem>>, vector<6x9xf32>
    %c0_7 = arith.constant 0 : index
    %c0_8 = arith.constant 0 : index
    %79 = vector.load %arg5[%c0_7, %c0_8] : memref<6x1xf32, #tpu.memory_space<vmem>>, vector<6x1xf32>
    %80 = vector.shape_cast %79 : vector<6x1xf32> to vector<6x1xf32>
    %81 = vector.broadcast %80 : vector<6x1xf32> to vector<6x128xf32>
    %82 = vector.extract_strided_slice %78 {offsets = [0, 0], sizes = [6, 1], strides = [1, 1]} : vector<6x9xf32> to vector<6x1xf32>
    %83 = vector.extract_strided_slice %77 {offsets = [0, 0], sizes = [1, 128], strides = [1, 1]} : vector<9x128xf32> to vector<1x128xf32>
    %84 = vector.broadcast %82 : vector<6x1xf32> to vector<6x128xf32>
    %85 = vector.broadcast %83 : vector<1x128xf32> to vector<6x128xf32>
    %86 = arith.mulf %84, %85 : vector<6x128xf32>
    %87 = arith.addf %81, %86 : vector<6x128xf32>
    %88 = vector.extract_strided_slice %78 {offsets = [0, 1], sizes = [6, 1], strides = [1, 1]} : vector<6x9xf32> to vector<6x1xf32>
    %89 = vector.extract_strided_slice %77 {offsets = [1, 0], sizes = [1, 128], strides = [1, 1]} : vector<9x128xf32> to vector<1x128xf32>
    %90 = vector.broadcast %88 : vector<6x1xf32> to vector<6x128xf32>
    %91 = vector.broadcast %89 : vector<1x128xf32> to vector<6x128xf32>
    %92 = arith.mulf %90, %91 : vector<6x128xf32>
    %93 = arith.addf %87, %92 : vector<6x128xf32>
    %94 = vector.extract_strided_slice %78 {offsets = [0, 2], sizes = [6, 1], strides = [1, 1]} : vector<6x9xf32> to vector<6x1xf32>
    %95 = vector.extract_strided_slice %77 {offsets = [2, 0], sizes = [1, 128], strides = [1, 1]} : vector<9x128xf32> to vector<1x128xf32>
    %96 = vector.broadcast %94 : vector<6x1xf32> to vector<6x128xf32>
    %97 = vector.broadcast %95 : vector<1x128xf32> to vector<6x128xf32>
    %98 = arith.mulf %96, %97 : vector<6x128xf32>
    %99 = arith.addf %93, %98 : vector<6x128xf32>
    %100 = vector.extract_strided_slice %78 {offsets = [0, 3], sizes = [6, 1], strides = [1, 1]} : vector<6x9xf32> to vector<6x1xf32>
    %101 = vector.extract_strided_slice %77 {offsets = [3, 0], sizes = [1, 128], strides = [1, 1]} : vector<9x128xf32> to vector<1x128xf32>
    %102 = vector.broadcast %100 : vector<6x1xf32> to vector<6x128xf32>
    %103 = vector.broadcast %101 : vector<1x128xf32> to vector<6x128xf32>
    %104 = arith.mulf %102, %103 : vector<6x128xf32>
    %105 = arith.addf %99, %104 : vector<6x128xf32>
    %106 = vector.extract_strided_slice %78 {offsets = [0, 4], sizes = [6, 1], strides = [1, 1]} : vector<6x9xf32> to vector<6x1xf32>
    %107 = vector.extract_strided_slice %77 {offsets = [4, 0], sizes = [1, 128], strides = [1, 1]} : vector<9x128xf32> to vector<1x128xf32>
    %108 = vector.broadcast %106 : vector<6x1xf32> to vector<6x128xf32>
    %109 = vector.broadcast %107 : vector<1x128xf32> to vector<6x128xf32>
    %110 = arith.mulf %108, %109 : vector<6x128xf32>
    %111 = arith.addf %105, %110 : vector<6x128xf32>
    %112 = vector.extract_strided_slice %78 {offsets = [0, 5], sizes = [6, 1], strides = [1, 1]} : vector<6x9xf32> to vector<6x1xf32>
    %113 = vector.extract_strided_slice %77 {offsets = [5, 0], sizes = [1, 128], strides = [1, 1]} : vector<9x128xf32> to vector<1x128xf32>
    %114 = vector.broadcast %112 : vector<6x1xf32> to vector<6x128xf32>
    %115 = vector.broadcast %113 : vector<1x128xf32> to vector<6x128xf32>
    %116 = arith.mulf %114, %115 : vector<6x128xf32>
    %117 = arith.addf %111, %116 : vector<6x128xf32>
    %118 = vector.extract_strided_slice %78 {offsets = [0, 6], sizes = [6, 1], strides = [1, 1]} : vector<6x9xf32> to vector<6x1xf32>
    %119 = vector.extract_strided_slice %77 {offsets = [6, 0], sizes = [1, 128], strides = [1, 1]} : vector<9x128xf32> to vector<1x128xf32>
    %120 = vector.broadcast %118 : vector<6x1xf32> to vector<6x128xf32>
    %121 = vector.broadcast %119 : vector<1x128xf32> to vector<6x128xf32>
    %122 = arith.mulf %120, %121 : vector<6x128xf32>
    %123 = arith.addf %117, %122 : vector<6x128xf32>
    %124 = vector.extract_strided_slice %78 {offsets = [0, 7], sizes = [6, 1], strides = [1, 1]} : vector<6x9xf32> to vector<6x1xf32>
    %125 = vector.extract_strided_slice %77 {offsets = [7, 0], sizes = [1, 128], strides = [1, 1]} : vector<9x128xf32> to vector<1x128xf32>
    %126 = vector.broadcast %124 : vector<6x1xf32> to vector<6x128xf32>
    %127 = vector.broadcast %125 : vector<1x128xf32> to vector<6x128xf32>
    %128 = arith.mulf %126, %127 : vector<6x128xf32>
    %129 = arith.addf %123, %128 : vector<6x128xf32>
    %130 = vector.extract_strided_slice %78 {offsets = [0, 8], sizes = [6, 1], strides = [1, 1]} : vector<6x9xf32> to vector<6x1xf32>
    %131 = vector.extract_strided_slice %77 {offsets = [8, 0], sizes = [1, 128], strides = [1, 1]} : vector<9x128xf32> to vector<1x128xf32>
    %132 = vector.broadcast %130 : vector<6x1xf32> to vector<6x128xf32>
    %133 = vector.broadcast %131 : vector<1x128xf32> to vector<6x128xf32>
    %134 = arith.mulf %132, %133 : vector<6x128xf32>
    %135 = arith.addf %129, %134 : vector<6x128xf32>
    %136 = math.tanh %135 : vector<6x128xf32>
    %c0_9 = arith.constant 0 : index
    %c0_10 = arith.constant 0 : index
    %137 = vector.load %arg6[%c0_9, %c0_10] : memref<4x6xf32, #tpu.memory_space<vmem>>, vector<4x6xf32>
    %c0_11 = arith.constant 0 : index
    %c0_12 = arith.constant 0 : index
    %138 = vector.load %arg7[%c0_11, %c0_12] : memref<4x1xf32, #tpu.memory_space<vmem>>, vector<4x1xf32>
    %139 = vector.shape_cast %138 : vector<4x1xf32> to vector<4x1xf32>
    %140 = vector.broadcast %139 : vector<4x1xf32> to vector<4x128xf32>
    %141 = vector.extract_strided_slice %137 {offsets = [0, 0], sizes = [4, 1], strides = [1, 1]} : vector<4x6xf32> to vector<4x1xf32>
    %142 = vector.extract_strided_slice %136 {offsets = [0, 0], sizes = [1, 128], strides = [1, 1]} : vector<6x128xf32> to vector<1x128xf32>
    %143 = vector.broadcast %141 : vector<4x1xf32> to vector<4x128xf32>
    %144 = vector.broadcast %142 : vector<1x128xf32> to vector<4x128xf32>
    %145 = arith.mulf %143, %144 : vector<4x128xf32>
    %146 = arith.addf %140, %145 : vector<4x128xf32>
    %147 = vector.extract_strided_slice %137 {offsets = [0, 1], sizes = [4, 1], strides = [1, 1]} : vector<4x6xf32> to vector<4x1xf32>
    %148 = vector.extract_strided_slice %136 {offsets = [1, 0], sizes = [1, 128], strides = [1, 1]} : vector<6x128xf32> to vector<1x128xf32>
    %149 = vector.broadcast %147 : vector<4x1xf32> to vector<4x128xf32>
    %150 = vector.broadcast %148 : vector<1x128xf32> to vector<4x128xf32>
    %151 = arith.mulf %149, %150 : vector<4x128xf32>
    %152 = arith.addf %146, %151 : vector<4x128xf32>
    %153 = vector.extract_strided_slice %137 {offsets = [0, 2], sizes = [4, 1], strides = [1, 1]} : vector<4x6xf32> to vector<4x1xf32>
    %154 = vector.extract_strided_slice %136 {offsets = [2, 0], sizes = [1, 128], strides = [1, 1]} : vector<6x128xf32> to vector<1x128xf32>
    %155 = vector.broadcast %153 : vector<4x1xf32> to vector<4x128xf32>
    %156 = vector.broadcast %154 : vector<1x128xf32> to vector<4x128xf32>
    %157 = arith.mulf %155, %156 : vector<4x128xf32>
    %158 = arith.addf %152, %157 : vector<4x128xf32>
    %159 = vector.extract_strided_slice %137 {offsets = [0, 3], sizes = [4, 1], strides = [1, 1]} : vector<4x6xf32> to vector<4x1xf32>
    %160 = vector.extract_strided_slice %136 {offsets = [3, 0], sizes = [1, 128], strides = [1, 1]} : vector<6x128xf32> to vector<1x128xf32>
    %161 = vector.broadcast %159 : vector<4x1xf32> to vector<4x128xf32>
    %162 = vector.broadcast %160 : vector<1x128xf32> to vector<4x128xf32>
    %163 = arith.mulf %161, %162 : vector<4x128xf32>
    %164 = arith.addf %158, %163 : vector<4x128xf32>
    %165 = vector.extract_strided_slice %137 {offsets = [0, 4], sizes = [4, 1], strides = [1, 1]} : vector<4x6xf32> to vector<4x1xf32>
    %166 = vector.extract_strided_slice %136 {offsets = [4, 0], sizes = [1, 128], strides = [1, 1]} : vector<6x128xf32> to vector<1x128xf32>
    %167 = vector.broadcast %165 : vector<4x1xf32> to vector<4x128xf32>
    %168 = vector.broadcast %166 : vector<1x128xf32> to vector<4x128xf32>
    %169 = arith.mulf %167, %168 : vector<4x128xf32>
    %170 = arith.addf %164, %169 : vector<4x128xf32>
    %171 = vector.extract_strided_slice %137 {offsets = [0, 5], sizes = [4, 1], strides = [1, 1]} : vector<4x6xf32> to vector<4x1xf32>
    %172 = vector.extract_strided_slice %136 {offsets = [5, 0], sizes = [1, 128], strides = [1, 1]} : vector<6x128xf32> to vector<1x128xf32>
    %173 = vector.broadcast %171 : vector<4x1xf32> to vector<4x128xf32>
    %174 = vector.broadcast %172 : vector<1x128xf32> to vector<4x128xf32>
    %175 = arith.mulf %173, %174 : vector<4x128xf32>
    %176 = arith.addf %170, %175 : vector<4x128xf32>
    %177 = math.tanh %176 : vector<4x128xf32>
    %c0_13 = arith.constant 0 : index
    %c0_14 = arith.constant 0 : index
    %178 = vector.load %arg8[%c0_13, %c0_14] : memref<3x4xf32, #tpu.memory_space<vmem>>, vector<3x4xf32>
    %c0_15 = arith.constant 0 : index
    %c0_16 = arith.constant 0 : index
    %179 = vector.load %arg9[%c0_15, %c0_16] : memref<3x1xf32, #tpu.memory_space<vmem>>, vector<3x1xf32>
    %180 = vector.shape_cast %179 : vector<3x1xf32> to vector<3x1xf32>
    %181 = vector.broadcast %180 : vector<3x1xf32> to vector<3x128xf32>
    %182 = vector.extract_strided_slice %178 {offsets = [0, 0], sizes = [3, 1], strides = [1, 1]} : vector<3x4xf32> to vector<3x1xf32>
    %183 = vector.extract_strided_slice %177 {offsets = [0, 0], sizes = [1, 128], strides = [1, 1]} : vector<4x128xf32> to vector<1x128xf32>
    %184 = vector.broadcast %182 : vector<3x1xf32> to vector<3x128xf32>
    %185 = vector.broadcast %183 : vector<1x128xf32> to vector<3x128xf32>
    %186 = arith.mulf %184, %185 : vector<3x128xf32>
    %187 = arith.addf %181, %186 : vector<3x128xf32>
    %188 = vector.extract_strided_slice %178 {offsets = [0, 1], sizes = [3, 1], strides = [1, 1]} : vector<3x4xf32> to vector<3x1xf32>
    %189 = vector.extract_strided_slice %177 {offsets = [1, 0], sizes = [1, 128], strides = [1, 1]} : vector<4x128xf32> to vector<1x128xf32>
    %190 = vector.broadcast %188 : vector<3x1xf32> to vector<3x128xf32>
    %191 = vector.broadcast %189 : vector<1x128xf32> to vector<3x128xf32>
    %192 = arith.mulf %190, %191 : vector<3x128xf32>
    %193 = arith.addf %187, %192 : vector<3x128xf32>
    %194 = vector.extract_strided_slice %178 {offsets = [0, 2], sizes = [3, 1], strides = [1, 1]} : vector<3x4xf32> to vector<3x1xf32>
    %195 = vector.extract_strided_slice %177 {offsets = [2, 0], sizes = [1, 128], strides = [1, 1]} : vector<4x128xf32> to vector<1x128xf32>
    %196 = vector.broadcast %194 : vector<3x1xf32> to vector<3x128xf32>
    %197 = vector.broadcast %195 : vector<1x128xf32> to vector<3x128xf32>
    %198 = arith.mulf %196, %197 : vector<3x128xf32>
    %199 = arith.addf %193, %198 : vector<3x128xf32>
    %200 = vector.extract_strided_slice %178 {offsets = [0, 3], sizes = [3, 1], strides = [1, 1]} : vector<3x4xf32> to vector<3x1xf32>
    %201 = vector.extract_strided_slice %177 {offsets = [3, 0], sizes = [1, 128], strides = [1, 1]} : vector<4x128xf32> to vector<1x128xf32>
    %202 = vector.broadcast %200 : vector<3x1xf32> to vector<3x128xf32>
    %203 = vector.broadcast %201 : vector<1x128xf32> to vector<3x128xf32>
    %204 = arith.mulf %202, %203 : vector<3x128xf32>
    %205 = arith.addf %199, %204 : vector<3x128xf32>
    %c0_17 = arith.constant 0 : index
    %c0_18 = arith.constant 0 : index
    %206 = vector.load %arg10[%c0_17, %c0_18] : memref<4x3xf32, #tpu.memory_space<vmem>>, vector<4x3xf32>
    %c0_19 = arith.constant 0 : index
    %c0_20 = arith.constant 0 : index
    %207 = vector.load %arg11[%c0_19, %c0_20] : memref<4x1xf32, #tpu.memory_space<vmem>>, vector<4x1xf32>
    %208 = vector.shape_cast %207 : vector<4x1xf32> to vector<4x1xf32>
    %209 = vector.broadcast %208 : vector<4x1xf32> to vector<4x128xf32>
    %210 = vector.extract_strided_slice %206 {offsets = [0, 0], sizes = [4, 1], strides = [1, 1]} : vector<4x3xf32> to vector<4x1xf32>
    %211 = vector.extract_strided_slice %205 {offsets = [0, 0], sizes = [1, 128], strides = [1, 1]} : vector<3x128xf32> to vector<1x128xf32>
    %212 = vector.broadcast %210 : vector<4x1xf32> to vector<4x128xf32>
    %213 = vector.broadcast %211 : vector<1x128xf32> to vector<4x128xf32>
    %214 = arith.mulf %212, %213 : vector<4x128xf32>
    %215 = arith.addf %209, %214 : vector<4x128xf32>
    %216 = vector.extract_strided_slice %206 {offsets = [0, 1], sizes = [4, 1], strides = [1, 1]} : vector<4x3xf32> to vector<4x1xf32>
    %217 = vector.extract_strided_slice %205 {offsets = [1, 0], sizes = [1, 128], strides = [1, 1]} : vector<3x128xf32> to vector<1x128xf32>
    %218 = vector.broadcast %216 : vector<4x1xf32> to vector<4x128xf32>
    %219 = vector.broadcast %217 : vector<1x128xf32> to vector<4x128xf32>
    %220 = arith.mulf %218, %219 : vector<4x128xf32>
    %221 = arith.addf %215, %220 : vector<4x128xf32>
    %222 = vector.extract_strided_slice %206 {offsets = [0, 2], sizes = [4, 1], strides = [1, 1]} : vector<4x3xf32> to vector<4x1xf32>
    %223 = vector.extract_strided_slice %205 {offsets = [2, 0], sizes = [1, 128], strides = [1, 1]} : vector<3x128xf32> to vector<1x128xf32>
    %224 = vector.broadcast %222 : vector<4x1xf32> to vector<4x128xf32>
    %225 = vector.broadcast %223 : vector<1x128xf32> to vector<4x128xf32>
    %226 = arith.mulf %224, %225 : vector<4x128xf32>
    %227 = arith.addf %221, %226 : vector<4x128xf32>
    %228 = math.tanh %227 : vector<4x128xf32>
    %c0_21 = arith.constant 0 : index
    %c0_22 = arith.constant 0 : index
    %229 = vector.load %arg12[%c0_21, %c0_22] : memref<6x4xf32, #tpu.memory_space<vmem>>, vector<6x4xf32>
    %c0_23 = arith.constant 0 : index
    %c0_24 = arith.constant 0 : index
    %230 = vector.load %arg13[%c0_23, %c0_24] : memref<6x1xf32, #tpu.memory_space<vmem>>, vector<6x1xf32>
    %231 = vector.shape_cast %230 : vector<6x1xf32> to vector<6x1xf32>
    %232 = vector.broadcast %231 : vector<6x1xf32> to vector<6x128xf32>
    %233 = vector.extract_strided_slice %229 {offsets = [0, 0], sizes = [6, 1], strides = [1, 1]} : vector<6x4xf32> to vector<6x1xf32>
    %234 = vector.extract_strided_slice %228 {offsets = [0, 0], sizes = [1, 128], strides = [1, 1]} : vector<4x128xf32> to vector<1x128xf32>
    %235 = vector.broadcast %233 : vector<6x1xf32> to vector<6x128xf32>
    %236 = vector.broadcast %234 : vector<1x128xf32> to vector<6x128xf32>
    %237 = arith.mulf %235, %236 : vector<6x128xf32>
    %238 = arith.addf %232, %237 : vector<6x128xf32>
    %239 = vector.extract_strided_slice %229 {offsets = [0, 1], sizes = [6, 1], strides = [1, 1]} : vector<6x4xf32> to vector<6x1xf32>
    %240 = vector.extract_strided_slice %228 {offsets = [1, 0], sizes = [1, 128], strides = [1, 1]} : vector<4x128xf32> to vector<1x128xf32>
    %241 = vector.broadcast %239 : vector<6x1xf32> to vector<6x128xf32>
    %242 = vector.broadcast %240 : vector<1x128xf32> to vector<6x128xf32>
    %243 = arith.mulf %241, %242 : vector<6x128xf32>
    %244 = arith.addf %238, %243 : vector<6x128xf32>
    %245 = vector.extract_strided_slice %229 {offsets = [0, 2], sizes = [6, 1], strides = [1, 1]} : vector<6x4xf32> to vector<6x1xf32>
    %246 = vector.extract_strided_slice %228 {offsets = [2, 0], sizes = [1, 128], strides = [1, 1]} : vector<4x128xf32> to vector<1x128xf32>
    %247 = vector.broadcast %245 : vector<6x1xf32> to vector<6x128xf32>
    %248 = vector.broadcast %246 : vector<1x128xf32> to vector<6x128xf32>
    %249 = arith.mulf %247, %248 : vector<6x128xf32>
    %250 = arith.addf %244, %249 : vector<6x128xf32>
    %251 = vector.extract_strided_slice %229 {offsets = [0, 3], sizes = [6, 1], strides = [1, 1]} : vector<6x4xf32> to vector<6x1xf32>
    %252 = vector.extract_strided_slice %228 {offsets = [3, 0], sizes = [1, 128], strides = [1, 1]} : vector<4x128xf32> to vector<1x128xf32>
    %253 = vector.broadcast %251 : vector<6x1xf32> to vector<6x128xf32>
    %254 = vector.broadcast %252 : vector<1x128xf32> to vector<6x128xf32>
    %255 = arith.mulf %253, %254 : vector<6x128xf32>
    %256 = arith.addf %250, %255 : vector<6x128xf32>
    %257 = math.tanh %256 : vector<6x128xf32>
    %c0_25 = arith.constant 0 : index
    %c0_26 = arith.constant 0 : index
    %258 = vector.load %arg14[%c0_25, %c0_26] : memref<9x6xf32, #tpu.memory_space<vmem>>, vector<9x6xf32>
    %c0_27 = arith.constant 0 : index
    %c0_28 = arith.constant 0 : index
    %259 = vector.load %arg15[%c0_27, %c0_28] : memref<9x1xf32, #tpu.memory_space<vmem>>, vector<9x1xf32>
    %260 = vector.shape_cast %259 : vector<9x1xf32> to vector<9x1xf32>
    %261 = vector.broadcast %260 : vector<9x1xf32> to vector<9x128xf32>
    %262 = vector.extract_strided_slice %258 {offsets = [0, 0], sizes = [9, 1], strides = [1, 1]} : vector<9x6xf32> to vector<9x1xf32>
    %263 = vector.extract_strided_slice %257 {offsets = [0, 0], sizes = [1, 128], strides = [1, 1]} : vector<6x128xf32> to vector<1x128xf32>
    %264 = vector.broadcast %262 : vector<9x1xf32> to vector<9x128xf32>
    %265 = vector.broadcast %263 : vector<1x128xf32> to vector<9x128xf32>
    %266 = arith.mulf %264, %265 : vector<9x128xf32>
    %267 = arith.addf %261, %266 : vector<9x128xf32>
    %268 = vector.extract_strided_slice %258 {offsets = [0, 1], sizes = [9, 1], strides = [1, 1]} : vector<9x6xf32> to vector<9x1xf32>
    %269 = vector.extract_strided_slice %257 {offsets = [1, 0], sizes = [1, 128], strides = [1, 1]} : vector<6x128xf32> to vector<1x128xf32>
    %270 = vector.broadcast %268 : vector<9x1xf32> to vector<9x128xf32>
    %271 = vector.broadcast %269 : vector<1x128xf32> to vector<9x128xf32>
    %272 = arith.mulf %270, %271 : vector<9x128xf32>
    %273 = arith.addf %267, %272 : vector<9x128xf32>
    %274 = vector.extract_strided_slice %258 {offsets = [0, 2], sizes = [9, 1], strides = [1, 1]} : vector<9x6xf32> to vector<9x1xf32>
    %275 = vector.extract_strided_slice %257 {offsets = [2, 0], sizes = [1, 128], strides = [1, 1]} : vector<6x128xf32> to vector<1x128xf32>
    %276 = vector.broadcast %274 : vector<9x1xf32> to vector<9x128xf32>
    %277 = vector.broadcast %275 : vector<1x128xf32> to vector<9x128xf32>
    %278 = arith.mulf %276, %277 : vector<9x128xf32>
    %279 = arith.addf %273, %278 : vector<9x128xf32>
    %280 = vector.extract_strided_slice %258 {offsets = [0, 3], sizes = [9, 1], strides = [1, 1]} : vector<9x6xf32> to vector<9x1xf32>
    %281 = vector.extract_strided_slice %257 {offsets = [3, 0], sizes = [1, 128], strides = [1, 1]} : vector<6x128xf32> to vector<1x128xf32>
    %282 = vector.broadcast %280 : vector<9x1xf32> to vector<9x128xf32>
    %283 = vector.broadcast %281 : vector<1x128xf32> to vector<9x128xf32>
    %284 = arith.mulf %282, %283 : vector<9x128xf32>
    %285 = arith.addf %279, %284 : vector<9x128xf32>
    %286 = vector.extract_strided_slice %258 {offsets = [0, 4], sizes = [9, 1], strides = [1, 1]} : vector<9x6xf32> to vector<9x1xf32>
    %287 = vector.extract_strided_slice %257 {offsets = [4, 0], sizes = [1, 128], strides = [1, 1]} : vector<6x128xf32> to vector<1x128xf32>
    %288 = vector.broadcast %286 : vector<9x1xf32> to vector<9x128xf32>
    %289 = vector.broadcast %287 : vector<1x128xf32> to vector<9x128xf32>
    %290 = arith.mulf %288, %289 : vector<9x128xf32>
    %291 = arith.addf %285, %290 : vector<9x128xf32>
    %292 = vector.extract_strided_slice %258 {offsets = [0, 5], sizes = [9, 1], strides = [1, 1]} : vector<9x6xf32> to vector<9x1xf32>
    %293 = vector.extract_strided_slice %257 {offsets = [5, 0], sizes = [1, 128], strides = [1, 1]} : vector<6x128xf32> to vector<1x128xf32>
    %294 = vector.broadcast %292 : vector<9x1xf32> to vector<9x128xf32>
    %295 = vector.broadcast %293 : vector<1x128xf32> to vector<9x128xf32>
    %296 = arith.mulf %294, %295 : vector<9x128xf32>
    %297 = arith.addf %291, %296 : vector<9x128xf32>
    %298 = math.tanh %297 : vector<9x128xf32>
    %c0_29 = arith.constant 0 : index
    %c0_30 = arith.constant 0 : index
    %299 = vector.load %arg16[%c0_29, %c0_30] : memref<12x9xf32, #tpu.memory_space<vmem>>, vector<12x9xf32>
    %c0_31 = arith.constant 0 : index
    %c0_32 = arith.constant 0 : index
    %300 = vector.load %arg17[%c0_31, %c0_32] : memref<12x1xf32, #tpu.memory_space<vmem>>, vector<12x1xf32>
    %301 = vector.shape_cast %300 : vector<12x1xf32> to vector<12x1xf32>
    %302 = vector.broadcast %301 : vector<12x1xf32> to vector<12x128xf32>
    %303 = vector.extract_strided_slice %299 {offsets = [0, 0], sizes = [12, 1], strides = [1, 1]} : vector<12x9xf32> to vector<12x1xf32>
    %304 = vector.extract_strided_slice %298 {offsets = [0, 0], sizes = [1, 128], strides = [1, 1]} : vector<9x128xf32> to vector<1x128xf32>
    %305 = vector.broadcast %303 : vector<12x1xf32> to vector<12x128xf32>
    %306 = vector.broadcast %304 : vector<1x128xf32> to vector<12x128xf32>
    %307 = arith.mulf %305, %306 : vector<12x128xf32>
    %308 = arith.addf %302, %307 : vector<12x128xf32>
    %309 = vector.extract_strided_slice %299 {offsets = [0, 1], sizes = [12, 1], strides = [1, 1]} : vector<12x9xf32> to vector<12x1xf32>
    %310 = vector.extract_strided_slice %298 {offsets = [1, 0], sizes = [1, 128], strides = [1, 1]} : vector<9x128xf32> to vector<1x128xf32>
    %311 = vector.broadcast %309 : vector<12x1xf32> to vector<12x128xf32>
    %312 = vector.broadcast %310 : vector<1x128xf32> to vector<12x128xf32>
    %313 = arith.mulf %311, %312 : vector<12x128xf32>
    %314 = arith.addf %308, %313 : vector<12x128xf32>
    %315 = vector.extract_strided_slice %299 {offsets = [0, 2], sizes = [12, 1], strides = [1, 1]} : vector<12x9xf32> to vector<12x1xf32>
    %316 = vector.extract_strided_slice %298 {offsets = [2, 0], sizes = [1, 128], strides = [1, 1]} : vector<9x128xf32> to vector<1x128xf32>
    %317 = vector.broadcast %315 : vector<12x1xf32> to vector<12x128xf32>
    %318 = vector.broadcast %316 : vector<1x128xf32> to vector<12x128xf32>
    %319 = arith.mulf %317, %318 : vector<12x128xf32>
    %320 = arith.addf %314, %319 : vector<12x128xf32>
    %321 = vector.extract_strided_slice %299 {offsets = [0, 3], sizes = [12, 1], strides = [1, 1]} : vector<12x9xf32> to vector<12x1xf32>
    %322 = vector.extract_strided_slice %298 {offsets = [3, 0], sizes = [1, 128], strides = [1, 1]} : vector<9x128xf32> to vector<1x128xf32>
    %323 = vector.broadcast %321 : vector<12x1xf32> to vector<12x128xf32>
    %324 = vector.broadcast %322 : vector<1x128xf32> to vector<12x128xf32>
    %325 = arith.mulf %323, %324 : vector<12x128xf32>
    %326 = arith.addf %320, %325 : vector<12x128xf32>
    %327 = vector.extract_strided_slice %299 {offsets = [0, 4], sizes = [12, 1], strides = [1, 1]} : vector<12x9xf32> to vector<12x1xf32>
    %328 = vector.extract_strided_slice %298 {offsets = [4, 0], sizes = [1, 128], strides = [1, 1]} : vector<9x128xf32> to vector<1x128xf32>
    %329 = vector.broadcast %327 : vector<12x1xf32> to vector<12x128xf32>
    %330 = vector.broadcast %328 : vector<1x128xf32> to vector<12x128xf32>
    %331 = arith.mulf %329, %330 : vector<12x128xf32>
    %332 = arith.addf %326, %331 : vector<12x128xf32>
    %333 = vector.extract_strided_slice %299 {offsets = [0, 5], sizes = [12, 1], strides = [1, 1]} : vector<12x9xf32> to vector<12x1xf32>
    %334 = vector.extract_strided_slice %298 {offsets = [5, 0], sizes = [1, 128], strides = [1, 1]} : vector<9x128xf32> to vector<1x128xf32>
    %335 = vector.broadcast %333 : vector<12x1xf32> to vector<12x128xf32>
    %336 = vector.broadcast %334 : vector<1x128xf32> to vector<12x128xf32>
    %337 = arith.mulf %335, %336 : vector<12x128xf32>
    %338 = arith.addf %332, %337 : vector<12x128xf32>
    %339 = vector.extract_strided_slice %299 {offsets = [0, 6], sizes = [12, 1], strides = [1, 1]} : vector<12x9xf32> to vector<12x1xf32>
    %340 = vector.extract_strided_slice %298 {offsets = [6, 0], sizes = [1, 128], strides = [1, 1]} : vector<9x128xf32> to vector<1x128xf32>
    %341 = vector.broadcast %339 : vector<12x1xf32> to vector<12x128xf32>
    %342 = vector.broadcast %340 : vector<1x128xf32> to vector<12x128xf32>
    %343 = arith.mulf %341, %342 : vector<12x128xf32>
    %344 = arith.addf %338, %343 : vector<12x128xf32>
    %345 = vector.extract_strided_slice %299 {offsets = [0, 7], sizes = [12, 1], strides = [1, 1]} : vector<12x9xf32> to vector<12x1xf32>
    %346 = vector.extract_strided_slice %298 {offsets = [7, 0], sizes = [1, 128], strides = [1, 1]} : vector<9x128xf32> to vector<1x128xf32>
    %347 = vector.broadcast %345 : vector<12x1xf32> to vector<12x128xf32>
    %348 = vector.broadcast %346 : vector<1x128xf32> to vector<12x128xf32>
    %349 = arith.mulf %347, %348 : vector<12x128xf32>
    %350 = arith.addf %344, %349 : vector<12x128xf32>
    %351 = vector.extract_strided_slice %299 {offsets = [0, 8], sizes = [12, 1], strides = [1, 1]} : vector<12x9xf32> to vector<12x1xf32>
    %352 = vector.extract_strided_slice %298 {offsets = [8, 0], sizes = [1, 128], strides = [1, 1]} : vector<9x128xf32> to vector<1x128xf32>
    %353 = vector.broadcast %351 : vector<12x1xf32> to vector<12x128xf32>
    %354 = vector.broadcast %352 : vector<1x128xf32> to vector<12x128xf32>
    %355 = arith.mulf %353, %354 : vector<12x128xf32>
    %356 = arith.addf %350, %355 : vector<12x128xf32>
    %c0_33 = arith.constant 0 : index
    %c0_34 = arith.constant 0 : index
    %357 = vector.load %arg18[%c0_33, %c0_34] : memref<12x128xf32, #tpu.memory_space<vmem>>, vector<12x128xf32>
    tpu.vector_store %arg18[%c0_33, %c0_34], %356 {strides = array<i32>} : memref<12x128xf32, #tpu.memory_space<vmem>>, vector<12x128xf32>,
    return
  }
  func.func @transform_0(%arg0: i32) -> (i32, i32) {
    %c0_i32 = arith.constant 0 : i32
    %c0_i32_0 = arith.constant 0 : i32
    return %c0_i32, %arg0 : i32, i32
  }
  func.func @transform_1(%arg0: i32) -> (i32, i32) {
    %c0_i32 = arith.constant 0 : i32
    %c0_i32_0 = arith.constant 0 : i32
    %c0_i32_1 = arith.constant 0 : i32
    return %c0_i32, %c0_i32_0 : i32, i32
  }
  func.func @transform_2(%arg0: i32) -> (i32, i32) {
    %c0_i32 = arith.constant 0 : i32
    %c0_i32_0 = arith.constant 0 : i32
    %c0_i32_1 = arith.constant 0 : i32
    return %c0_i32, %c0_i32_0 : i32, i32
  }
  func.func @transform_3(%arg0: i32) -> (i32, i32) {
    %c0_i32 = arith.constant 0 : i32
    %c0_i32_0 = arith.constant 0 : i32
    %c0_i32_1 = arith.constant 0 : i32
    return %c0_i32, %c0_i32_0 : i32, i32
  }
  func.func @transform_4(%arg0: i32) -> (i32, i32) {
    %c0_i32 = arith.constant 0 : i32
    %c0_i32_0 = arith.constant 0 : i32
    %c0_i32_1 = arith.constant 0 : i32
    return %c0_i32, %c0_i32_0 : i32, i32
  }
  func.func @transform_5(%arg0: i32) -> (i32, i32) {
    %c0_i32 = arith.constant 0 : i32
    %c0_i32_0 = arith.constant 0 : i32
    %c0_i32_1 = arith.constant 0 : i32
    return %c0_i32, %c0_i32_0 : i32, i32
  }
  func.func @transform_6(%arg0: i32) -> (i32, i32) {
    %c0_i32 = arith.constant 0 : i32
    %c0_i32_0 = arith.constant 0 : i32
    %c0_i32_1 = arith.constant 0 : i32
    return %c0_i32, %c0_i32_0 : i32, i32
  }
  func.func @transform_7(%arg0: i32) -> (i32, i32) {
    %c0_i32 = arith.constant 0 : i32
    %c0_i32_0 = arith.constant 0 : i32
    %c0_i32_1 = arith.constant 0 : i32
    return %c0_i32, %c0_i32_0 : i32, i32
  }
  func.func @transform_8(%arg0: i32) -> (i32, i32) {
    %c0_i32 = arith.constant 0 : i32
    %c0_i32_0 = arith.constant 0 : i32
    %c0_i32_1 = arith.constant 0 : i32
    return %c0_i32, %c0_i32_0 : i32, i32
  }
  func.func @transform_9(%arg0: i32) -> (i32, i32) {
    %c0_i32 = arith.constant 0 : i32
    %c0_i32_0 = arith.constant 0 : i32
    %c0_i32_1 = arith.constant 0 : i32
    return %c0_i32, %c0_i32_0 : i32, i32
  }
  func.func @transform_10(%arg0: i32) -> (i32, i32) {
    %c0_i32 = arith.constant 0 : i32
    %c0_i32_0 = arith.constant 0 : i32
    %c0_i32_1 = arith.constant 0 : i32
    return %c0_i32, %c0_i32_0 : i32, i32
  }
  func.func @transform_11(%arg0: i32) -> (i32, i32) {
    %c0_i32 = arith.constant 0 : i32
    %c0_i32_0 = arith.constant 0 : i32
    %c0_i32_1 = arith.constant 0 : i32
    return %c0_i32, %c0_i32_0 : i32, i32
  }
  func.func @transform_12(%arg0: i32) -> (i32, i32) {
    %c0_i32 = arith.constant 0 : i32
    %c0_i32_0 = arith.constant 0 : i32
    %c0_i32_1 = arith.constant 0 : i32
    return %c0_i32, %c0_i32_0 : i32, i32
  }
  func.func @transform_13(%arg0: i32) -> (i32, i32) {
    %c0_i32 = arith.constant 0 : i32
    %c0_i32_0 = arith.constant 0 : i32
    %c0_i32_1 = arith.constant 0 : i32
    return %c0_i32, %c0_i32_0 : i32, i32
  }
  func.func @transform_14(%arg0: i32) -> (i32, i32) {
    %c0_i32 = arith.constant 0 : i32
    %c0_i32_0 = arith.constant 0 : i32
    %c0_i32_1 = arith.constant 0 : i32
    return %c0_i32, %c0_i32_0 : i32, i32
  }
  func.func @transform_15(%arg0: i32) -> (i32, i32) {
    %c0_i32 = arith.constant 0 : i32
    %c0_i32_0 = arith.constant 0 : i32
    %c0_i32_1 = arith.constant 0 : i32
    return %c0_i32, %c0_i32_0 : i32, i32
  }
  func.func @transform_16(%arg0: i32) -> (i32, i32) {
    %c0_i32 = arith.constant 0 : i32
    %c0_i32_0 = arith.constant 0 : i32
    %c0_i32_1 = arith.constant 0 : i32
    return %c0_i32, %c0_i32_0 : i32, i32
  }
  func.func @transform_17(%arg0: i32) -> (i32, i32) {
    %c0_i32 = arith.constant 0 : i32
    %c0_i32_0 = arith.constant 0 : i32
    return %c0_i32, %arg0 : i32, i32
  }
}

</mosaic_0001>

<bundles_post_ra>
// kernel: tpu_custom_call.1
= control target key start
LH: loop header
LB: loop body
LE: loop exit
PB: predicated region body
PF: predicated region fallthrough
CT: control target
= control target key end

     0   :  { %s1210_s0 = inlined_call_operand.vmem [shape: f32[12,128], index: 0, kind: input, shape index: {}]   ;;  %s1211_s1 = inlined_call_operand.vmem [shape: f32[9,12], index: 1, kind: input, shape index: {}]   ;;  %s1212_s2 = inlined_call_operand.vmem [shape: f32[9,1], index: 2, kind: input, shape index: {}]   ;;  %s1213_s3 = inlined_call_operand.vmem [shape: f32[6,9], index: 3, kind: input, shape index: {}]   ;;  %s1214_s4 = inlined_call_operand.vmem [shape: f32[6,1], index: 4, kind: input, shape index: {}]   ;;  %s1215_s5 = inlined_call_operand.vmem [shape: f32[4,6], index: 5, kind: input, shape index: {}]   ;;  %s1216_s6 = inlined_call_operand.vmem [shape: f32[4,1], index: 6, kind: input, shape index: {}]   ;;  %s1217_s7 = inlined_call_operand.vmem [shape: f32[3,4], index: 7, kind: input, shape index: {}]   ;;  %s1218_s8 = inlined_call_operand.vmem [shape: f32[3,1], index: 8, kind: input, shape index: {}]   ;;  %s1219_s9 = inlined_call_operand.vmem [shape: f32[4,3], index: 9, kind: input, shape index: {}]   ;;  %s1220_s10 = inlined_call_operand.vmem [shape: f32[4,1], index: 10, kind: input, shape index: {}]   ;;  %s1221_s11 = inlined_call_operand.vmem [shape: f32[6,4], index: 11, kind: input, shape index: {}]   ;;  %s1222_s12 = inlined_call_operand.vmem [shape: f32[6,1], index: 12, kind: input, shape index: {}]   ;;  %s1223_s13 = inlined_call_operand.vmem [shape: f32[9,6], index: 13, kind: input, shape index: {}]   ;;  %s1224_s14 = inlined_call_operand.vmem [shape: f32[9,1], index: 14, kind: input, shape index: {}]   ;;  %s1225_s15 = inlined_call_operand.vmem [shape: f32[12,9], index: 15, kind: input, shape index: {}]   ;;  %s1226_s16 = inlined_call_operand.vmem [shape: f32[12,1], index: 16, kind: input, shape index: {}]   ;;  %s1227_s17 = inlined_call_operand.hbm [shape: f32[12,128], index: 17, kind: output, shape index: {}]  }
   0x1   :  { %1230 = sst [smem:[#allocation5_spill]] %s1210_s0 }
   0x2   :  { %1231 = sst [smem:[#allocation6_spill]] %s1211_s1 }
   0x3   :  { %s1232_s26 = sld [smem:[#allocation6_spill]]  ;;  %v843_v1 = vmov 2   ;;  %v844_v2 = vmov 1   ;;  %v845_v3 = vmov 0  }
   0x4   :  { %725 = vset.pattern.permute.xlu0 %v843_v1  ;;  %724 = vset.pattern.permute.xlu2 %v844_v2 }
   0x5   :  { %723 = vset.pattern.permute.xlu1 %v845_v3 }
   0x9   :  { %v951_v0 = vld [vmem:[%s1232_s26] sm:$0xff] }
   0xa   :  { %102 = vperm.xlu0 %725, %v951_v0  }
   0xb   :  { %22 = vsyncpa [#allocation3], 0  ;;  %89 = vperm.xlu2 %724, %v951_v0   ;;  %75 = vperm.xlu1 %723, %v951_v0   ;;  %v60_v4 = vld [vmem:[%s1232_s26 + $0x8] sm:$0x1]  ;;  %v846_v5 = vmov 7   ;;  %v847_v6 = vmov 3  }
   0xc   :  { %v848_v7 = vmov 9   ;;  %v849_v8 = vmov 4   ;;  %v61_v9 = vld [vmem:[%s1212_s2] sm:$0xff]  ;;  %v62_v10 = vld [vmem:[%s1212_s2 + $0x8] sm:$0x1]  ;;  %v850_v11 = vmov 5  }
   0xd   :  { %v234_v12 = vld [vmem:[%s1214_s4] sm:$0x3f]  ;;  %v851_v13 = vmov 6   ;;  %v852_v15 = vmov 8   ;;  %v853_v17 = vmov 10   ;;  %v854_v18 = vmov 11  }
   0xe   :  { %v306_v14 = vld [vmem:[%s1216_s6] sm:$0xf]  ;;  %s1233_s26 = sld [smem:[#allocation5_spill]]  ;;  %s856_s27 = smov 128  }
   0xf   :  { %v233_v16 = vld [vmem:[%s1213_s3] sm:$0x3f]  ;;  %s857_s28 = smov 8  }
  0x10   :  { %v305_v20 = vld [vmem:[%s1215_s5] sm:$0xf] }
  0x11   :  { %v1015_v25 = vld [vmem:[%s1221_s11] sm:$0x3f] }
  0x12   :  { %734 = vset.pattern.permute.xlu0 %v846_v5  ;;  %v1025_v29 = vld [vmem:[%s1217_s7] sm:$0x7]  ;;  %s696_s7 = sshll.u32 %s1227_s17, 4  ;;  %s697_s7 = int_to_ptr.hbm [resolvable:$true] %s696_s7 }
  0x13   :  { %93 = vperm.xlu2 %724, %v60_v4   ;;  %80 = vperm.xlu1 %723, %v60_v4   ;;  %v1048_v36 = vld [vmem:[%s1219_s9] sm:$0xf] }
  0x14   :  { %167 = vperm.xlu0 %734, %v951_v0   ;;  %v1038_v33 = vld [vmem:[%s1233_s26] sm:$0xff] }
  0x15   :  { %v83_v35 = vperm.slane %v1038_v33, 0  ;;  %v96_v37 = vperm.slane %v1038_v33, 1  ;;  %v109_v39 = vperm.slane %v1038_v33, 2  ;;  %v357_v41 = vld [vmem:[%s1218_s8] sm:$0x7]  ;;  %v122_v42 = vperm.slane %v1038_v33, 3 }
  0x16   :  { %v135_v46 = vperm.slane %v1038_v33, 4  ;;  %v148_v53 = vperm.slane %v1038_v33, 5 }
  0x1b   :  { %727 = vset.pattern.permute.xlu2 %v847_v6  ;;  %726 = vset.pattern.permute.xlu1 %v843_v1 }
  0x1c   :  { %739 = vset.pattern.permute.xlu0 %v848_v7  ;;  %115 = vperm.xlu2 %727, %v951_v0  }
  0x1d   :  { %106 = vperm.xlu1 %726, %v60_v4   ;;  %197 = vperm.xlu0 %739, %v60_v4  }
  0x24   :  { %729 = vset.pattern.permute.xlu2 %v849_v8 }
  0x25   :  { %728 = vset.pattern.permute.xlu1 %v847_v6  ;;  %740 = vset.pattern.permute.xlu0 %v845_v3 }
  0x26   :  { %128 = vperm.xlu2 %729, %v951_v0   ;;  %119 = vperm.xlu1 %728, %v60_v4  }
  0x27   :  { %65 = vperm.xlu0 %740, %v61_v9  }
  0x2e   :  { %731 = vset.pattern.permute.xlu2 %v850_v11  ;;  %730 = vset.pattern.permute.xlu1 %v850_v11 }
  0x2f   :  { %70 = vperm.xlu0 %740, %v62_v10   ;;  %145 = vperm.xlu2 %731, %v60_v4   ;;  %v161_v10 = vperm.slane %v1038_v33, 6 }
  0x30   :  { %141 = vperm.xlu1 %730, %v951_v0  }
  0x37   :  { %237 = vperm.xlu0 %740, %v234_v12   ;;  %733 = vset.pattern.permute.xlu2 %v851_v13 }
  0x38   :  { %732 = vset.pattern.permute.xlu1 %v851_v13  ;;  %158 = vperm.xlu2 %733, %v60_v4  }
  0x39   :  { %154 = vperm.xlu1 %732, %v951_v0  }
  0x3f   :  { %309 = vperm.xlu0 %740, %v306_v14   ;;  %v1074_v14 = vld [vmem:[%s1223_s13 + $0x8] sm:$0x1] }
  0x40   :  { %736 = vset.pattern.permute.xlu2 %v852_v15 }
  0x41   :  { %735 = vset.pattern.permute.xlu1 %v846_v5  ;;  %180 = vperm.xlu2 %736, %v951_v0  }
  0x42   :  { %171 = vperm.xlu1 %735, %v60_v4  }
  0x47   :  { %753 = vset.pattern.permute.xlu0 %v849_v8 }
  0x48   :  { %132 = vperm.xlu0 %753, %v60_v4  }
  0x49   :  { %738 = vset.pattern.permute.xlu2 %v848_v7 }
  0x4a   :  { %737 = vset.pattern.permute.xlu1 %v852_v15  ;;  %193 = vperm.xlu2 %738, %v951_v0  }
  0x4b   :  { %184 = vperm.xlu1 %737, %v60_v4  }
  0x50   :  { %270 = vperm.xlu0 %753, %v233_v16  }
  0x52   :  { %742 = vset.pattern.permute.xlu2 %v853_v17 }
  0x53   :  { %741 = vset.pattern.permute.xlu1 %v853_v17  ;;  %210 = vperm.xlu2 %742, %v60_v4   ;;  %v393_v17 = vld [vmem:[%s1220_s10] sm:$0xf] }
  0x54   :  { %206 = vperm.xlu1 %741, %v951_v0  }
  0x58   :  { %342 = vperm.xlu0 %753, %v305_v20  }
  0x5b   :  { %744 = vset.pattern.permute.xlu2 %v854_v18 }
  0x5c   :  { %743 = vset.pattern.permute.xlu1 %v854_v18  ;;  %223 = vperm.xlu2 %744, %v60_v4  }
  0x5d   :  { %219 = vperm.xlu1 %743, %v951_v0  }
  0x60   :  { %767 = vset.pattern.permute.xlu0 %v844_v2 }
  0x61   :  { %438 = vperm.xlu0 %767, %v1015_v25  }
  0x64   :  { %746 = vset.pattern.permute.xlu2 %v844_v2 }
  0x65   :  { %745 = vset.pattern.permute.xlu1 %v845_v3  ;;  %249 = vperm.xlu2 %746, %v233_v16   ;;  %v90_v19 = vpop.permute.xlu2 %89 }
  0x66   :  { %242 = vperm.xlu1 %745, %v233_v16   ;;  %v97_v44 = vmul.f32 %v96_v37, %v90_v19 }
  0x69   :  { %768 = vset.pattern.permute.xlu0 %v843_v1 }
  0x6a   :  { %379 = vperm.xlu0 %768, %v1025_v29  }
  0x6d   :  { %748 = vset.pattern.permute.xlu2 %v847_v6  ;;  %v1006_v21 = vpop.permute.xlu2 %93 }
  0x6e   :  { %747 = vset.pattern.permute.xlu1 %v843_v1  ;;  %263 = vperm.xlu2 %748, %v233_v16   ;;  %v98_v57 = vmul.f32 %v96_v37, %v1006_v21 }
  0x6f   :  { %256 = vperm.xlu1 %747, %v233_v16  }
  0x72   :  { %415 = vperm.xlu0 %768, %v1048_v36  }
  0x76   :  { %750 = vset.pattern.permute.xlu2 %v851_v13  ;;  %v116_v22 = vpop.permute.xlu2 %115 }
  0x77   :  { %749 = vset.pattern.permute.xlu1 %v850_v11  ;;  %284 = vperm.xlu2 %750, %v233_v16   ;;  %v123_v50 = vmul.f32 %v122_v42, %v116_v22 }
  0x78   :  { %277 = vperm.xlu1 %749, %v233_v16  }
  0x7a   :  { %506 = vperm.xlu0 %768, %v1074_v14  }
  0x7c   :  { %v103_v23 = vpop.permute.xlu0 %102 }
  0x7d   :  { %v76_v24 = vpop.permute.xlu1 %75  ;;  %v110_v45 = vmul.f32 %v109_v39, %v103_v23  ;;  %v1091_v23 = vld [vmem:[%s1223_s13] sm:$0xff] }
  0x7e   :  { %v84_v38 = vmul.f32 %v83_v35, %v76_v24 }
  0x7f   :  { %752 = vset.pattern.permute.xlu2 %v852_v15 }
  0x80   :  { %751 = vset.pattern.permute.xlu1 %v846_v5  ;;  %298 = vperm.xlu2 %752, %v233_v16   ;;  %v129_v26 = vpop.permute.xlu2 %128 }
  0x81   :  { %291 = vperm.xlu1 %751, %v233_v16   ;;  %v136_v51 = vmul.f32 %v135_v46, %v129_v26 }
  0x82   :  { %780 = vset.pattern.permute.xlu0 %v850_v11 }
  0x83   :  { %541 = vperm.xlu0 %780, %v1091_v23  }
  0x85   :  { %v81_v27 = vpop.permute.xlu1 %80 }
  0x86   :  { %v1020_v28 = vpop.permute.xlu0 %167  ;;  %v85_v54 = vmul.f32 %v83_v35, %v81_v27 }
  0x88   :  { %755 = vset.pattern.permute.xlu2 %v844_v2 }
  0x89   :  { %754 = vset.pattern.permute.xlu1 %v845_v3  ;;  %321 = vperm.xlu2 %755, %v305_v20   ;;  %v1031_v30 = vpop.permute.xlu2 %145 }
  0x8a   :  { %314 = vperm.xlu1 %754, %v305_v20   ;;  %v150_v35 = vmul.f32 %v148_v53, %v1031_v30 }
  0x8b   :  { %781 = vset.pattern.permute.xlu0 %v845_v3 }
  0x8c   :  { %475 = vperm.xlu0 %781, %v1091_v23  }
  0x8f   :  { %v107_v31 = vpop.permute.xlu1 %106  ;;  %v1033_v32 = vpop.permute.xlu0 %197 }
  0x90   :  { %v111_v62 = vmul.f32 %v109_v39, %v107_v31  ;;  %v423_v31 = vld [vmem:[%s1222_s12] sm:$0x3f]  ;;  %v174_v39 = vperm.slane %v1038_v33, 7 }
  0x91   :  { %757 = vset.pattern.permute.xlu2 %v847_v6 }
  0x92   :  { %756 = vset.pattern.permute.xlu1 %v843_v1  ;;  %335 = vperm.xlu2 %757, %v305_v20   ;;  %v1042_v34 = vpop.permute.xlu2 %158 }
  0x93   :  { %328 = vperm.xlu1 %756, %v305_v20  }
  0x98   :  { %v120_v40 = vpop.permute.xlu1 %119 }
  0x99   :  { %v66_v43 = vpop.permute.xlu0 %65  ;;  %v124_v7 = vmul.f32 %v122_v42, %v120_v40  ;;  %v163_v40 = vmul.f32 %v161_v10, %v1042_v34 }
  0x9a   :  { %v86_v47 = vadd.f32 %v84_v38, %v66_v43  ;;  %759 = vset.pattern.permute.xlu2 %v845_v3 }
  0x9b   :  { %758 = vset.pattern.permute.xlu1 %v850_v11  ;;  %360 = vperm.xlu2 %759, %v357_v41   ;;  %v1060_v48 = vpop.permute.xlu2 %180 }
  0x9c   :  { %v99_v49 = vadd.f32 %v97_v44, %v86_v47  ;;  %349 = vperm.xlu1 %758, %v305_v20  }
  0x9e   :  { %v112_v52 = vadd.f32 %v110_v45, %v99_v49 }
  0xa0   :  { %v125_v55 = vadd.f32 %v123_v50, %v112_v52 }
  0xa1   :  { %v71_v56 = vpop.permute.xlu0 %70 }
  0xa2   :  { %v87_v58 = vadd.f32 %v85_v54, %v71_v56  ;;  %v142_v59 = vpop.permute.xlu1 %141  ;;  %v138_v60 = vadd.f32 %v136_v51, %v125_v55 }
  0xa3   :  { %v149_v61 = vmul.f32 %v148_v53, %v142_v59  ;;  %761 = vset.pattern.permute.xlu2 %v844_v2 }
  0xa4   :  { %v100_v63 = vadd.f32 %v98_v57, %v87_v58  ;;  %760 = vset.pattern.permute.xlu1 %v845_v3  ;;  %372 = vperm.xlu2 %761, %v1025_v29   ;;  %v1067_v0 = vpop.permute.xlu2 %193 }
  0xa5   :  { %v151_v4 = vadd.f32 %v149_v61, %v138_v60  ;;  %365 = vperm.xlu1 %760, %v1025_v29   ;;  %v461_v61 = vld [vmem:[%s1224_s14] sm:$0xff] }
  0xa6   :  { %v113_v9 = vadd.f32 %v111_v62, %v100_v63 }
  0xa8   :  { %v126_v12 = vadd.f32 %v124_v7, %v113_v9 }
  0xa9   :  { %v1076_v16 = vpop.permute.xlu0 %237 }
  0xab   :  { %v155_v18 = vpop.permute.xlu1 %154 }
  0xac   :  { %v162_v19 = vmul.f32 %v161_v10, %v155_v18  ;;  %763 = vset.pattern.permute.xlu2 %v845_v3  ;;  %v1147_v10 = vld [vmem:[%s1225_s15] sm:$0xff] }
  0xad   :  { %762 = vset.pattern.permute.xlu1 %v847_v6  ;;  %396 = vperm.xlu2 %763, %v393_v17   ;;  %v211_v20 = vpop.permute.xlu2 %210 }
  0xae   :  { %v164_v21 = vadd.f32 %v162_v19, %v151_v4  ;;  %386 = vperm.xlu1 %762, %v1025_v29  }
  0xb1   :  { %v1085_v22 = vpop.permute.xlu0 %309 }
  0xb4   :  { %v172_v24 = vpop.permute.xlu1 %171 }
  0xb5   :  { %765 = vset.pattern.permute.xlu2 %v844_v2  ;;  %v176_v44 = vmul.f32 %v174_v39, %v172_v24 }
  0xb6   :  { %764 = vset.pattern.permute.xlu1 %v845_v3  ;;  %408 = vperm.xlu2 %765, %v1048_v36   ;;  %v1097_v26 = vpop.permute.xlu2 %223 }
  0xb7   :  { %401 = vperm.xlu1 %764, %v1048_v36   ;;  %v1110_v36 = vld [vmem:[%s1233_s26 + $0x8] sm:$0xf] }
  0xb8   :  { %v200_v30 = vperm.slane %v1110_v36, 1  ;;  %v187_v43 = vperm.slane %v1110_v36, 0  ;;  %v213_v33 = vperm.slane %v1110_v36, 2  ;;  %v226_v59 = vperm.slane %v1110_v36, 3 }
  0xba   :  { %v133_v27 = vpop.permute.xlu0 %132  ;;  %v202_v47 = vmul.f32 %v200_v30, %v1033_v32  ;;  %v215_v34 = vmul.f32 %v213_v33, %v211_v20  ;;  %v188_v52 = vmul.f32 %v187_v43, %v1060_v48  ;;  %v201_v32 = vmul.f32 %v200_v30, %v1067_v0  ;;  %v1129_v48 = vld [vmem:[%s1225_s15 + $0x8] sm:$0xf] }
  0xbb   :  { %v137_v29 = vmul.f32 %v135_v46, %v133_v27  ;;  %v175_v46 = vmul.f32 %v174_v39, %v1020_v28  ;;  %576 = vperm.xlu0 %781, %v1129_v48  }
  0xbd   :  { %v139_v37 = vadd.f32 %v137_v29, %v126_v12  ;;  %v185_v38 = vpop.permute.xlu1 %184  ;;  %v177_v53 = vadd.f32 %v175_v46, %v164_v21 }
  0xbe   :  { %766 = vset.pattern.permute.xlu2 %v845_v3  ;;  %v189_v50 = vmul.f32 %v187_v43, %v185_v38 }
  0xbf   :  { %v152_v41 = vadd.f32 %v150_v35, %v139_v37  ;;  %426 = vperm.xlu1 %764, %v423_v31   ;;  %431 = vperm.xlu2 %766, %v1015_v25   ;;  %v250_v42 = vpop.permute.xlu2 %249  ;;  %v190_v57 = vadd.f32 %v188_v52, %v177_v53  ;;  %v228_v37 = vmul.f32 %v226_v59, %v1097_v26 }
  0xc1   :  { %v165_v45 = vadd.f32 %v163_v40, %v152_v41  ;;  %v203_v60 = vadd.f32 %v201_v32, %v190_v57 }
  0xc3   :  { %v178_v49 = vadd.f32 %v176_v44, %v165_v45  ;;  %789 = vset.pattern.permute.xlu0 %v847_v6 }
  0xc4   :  { %611 = vperm.xlu0 %789, %v1147_v10  }
  0xc5   :  { %v191_v51 = vadd.f32 %v189_v50, %v178_v49 }
  0xc6   :  { %v207_v54 = vpop.permute.xlu1 %206 }
  0xc7   :  { %v204_v55 = vadd.f32 %v202_v47, %v191_v51  ;;  %769 = vset.pattern.permute.xlu1 %v843_v1  ;;  %770 = vset.pattern.permute.xlu2 %v847_v6  ;;  %v214_v58 = vmul.f32 %v213_v33, %v207_v54 }
  0xc8   :  { %445 = vperm.xlu1 %769, %v1015_v25   ;;  %452 = vperm.xlu2 %770, %v1015_v25   ;;  %v264_v28 = vpop.permute.xlu2 %263  ;;  %v462_v25 = vld [vmem:[%s1224_s14 + $0x8] sm:$0x1] }
  0xc9   :  { %v217_v56 = vadd.f32 %v215_v34, %v204_v55  ;;  %v216_v63 = vadd.f32 %v214_v58, %v203_v60  ;;  %v557_v58 = vld [vmem:[%s1226_s16] sm:$0xff] }
  0xcb   :  { %v230_v36 = vadd.f32 %v228_v37, %v217_v56 }
  0xcc   :  { %794 = vset.pattern.permute.xlu0 %v850_v11 }
  0xcd   :  { %641 = vperm.xlu0 %794, %v1129_v48  }
  0xcf   :  { %v220_v62 = vpop.permute.xlu1 %219 }
  0xd0   :  { %v227_v0 = vmul.f32 %v226_v59, %v220_v62  ;;  %771 = vset.pattern.permute.xlu1 %v845_v3  ;;  %772 = vset.pattern.permute.xlu2 %v845_v3 }
  0xd1   :  { %465 = vperm.xlu1 %771, %v461_v61   ;;  %470 = vperm.xlu2 %772, %v462_v25   ;;  %v285_v4 = vpop.permute.xlu2 %284 }
  0xd2   :  { %v229_v7 = vadd.f32 %v227_v0, %v216_v63  ;;  %v558_v63 = vld [vmem:[%s1226_s16 + $0x8] sm:$0xf]  ;;  %s855_s16 = smov [#allocation2]  }
  0xd3   :  { %s694_s11 = sshll.u32 %s855_s16, 4  ;;  %s695_s11 = int_to_ptr.vmem [resolvable:$true] %s694_s11 }
  0xd4   :  { %801 = vtanh.f32 %v229_v7 }
  0xd5   :  { %803 = vtanh.f32 %v230_v36  ;;  %799 = vset.pattern.permute.xlu0 %v852_v15 }
  0xd6   :  { %676 = vperm.xlu0 %799, %v1147_v10  }
  0xd8   :  { %v243_v9 = vpop.permute.xlu1 %242 }
  0xd9   :  { %480 = vperm.xlu1 %771, %v1074_v14   ;;  %773 = vset.pattern.permute.xlu2 %v844_v2 }
  0xda   :  { %v802_v12 = vpop.eup %801  ;;  %489 = vperm.xlu2 %773, %v1091_v23   ;;  %v299_v18 = vpop.permute.xlu2 %298 }
  0xdb   :  { %v245_v17 = vperm.slane %v802_v12, 0  ;;  %v252_v19 = vperm.slane %v802_v12, 1  ;;  %v259_v27 = vperm.slane %v802_v12, 2  ;;  %v266_v39 = vperm.slane %v802_v12, 3  ;;  %v804_v50 = vpop.eup %803 }
  0xdc   :  { %v273_v40 = vperm.slane %v802_v12, 4  ;;  %v280_v33 = vperm.slane %v802_v12, 5  ;;  %v287_v46 = vperm.slane %v802_v12, 6  ;;  %v294_v51 = vperm.slane %v802_v12, 7 }
  0xdd   :  { %v246_v20 = vmul.f32 %v245_v17, %v243_v9  ;;  %v253_v24 = vmul.f32 %v252_v19, %v250_v42  ;;  %v267_v41 = vmul.f32 %v266_v39, %v264_v28  ;;  %v271_v42 = vpop.permute.xlu0 %270  ;;  %v301_v53 = vperm.slane %v804_v50, 0 }
  0xde   :  { %v274_v26 = vmul.f32 %v273_v40, %v271_v42  ;;  %v288_v34 = vmul.f32 %v287_v46, %v285_v4 }
  0xdf   :  { %v247_v21 = vadd.f32 %v246_v20, %v1076_v16  ;;  %v302_v56 = vmul.f32 %v301_v53, %v299_v18 }
  0xe1   :  { %774 = vset.pattern.permute.xlu1 %v844_v2  ;;  %v257_v29 = vpop.permute.xlu1 %256  ;;  %v254_v31 = vadd.f32 %v253_v24, %v247_v21 }
  0xe2   :  { %v260_v35 = vmul.f32 %v259_v27, %v257_v29  ;;  %493 = vperm.xlu1 %774, %v1074_v14   ;;  %775 = vset.pattern.permute.xlu2 %v843_v1 }
  0xe3   :  { %502 = vperm.xlu2 %775, %v1091_v23   ;;  %v322_v38 = vpop.permute.xlu2 %321 }
  0xe4   :  { %v261_v16 = vadd.f32 %v260_v35, %v254_v31 }
  0xe5   :  { %v343_v24 = vpop.permute.xlu0 %342 }
  0xe6   :  { %v268_v30 = vadd.f32 %v267_v41, %v261_v16 }
  0xe8   :  { %v275_v47 = vadd.f32 %v274_v26, %v268_v30 }
  0xea   :  { %776 = vset.pattern.permute.xlu1 %v847_v6  ;;  %v278_v43 = vpop.permute.xlu1 %277 }
  0xeb   :  { %515 = vperm.xlu1 %776, %v1091_v23   ;;  %777 = vset.pattern.permute.xlu2 %v847_v6  ;;  %v281_v44 = vmul.f32 %v280_v33, %v278_v43 }
  0xec   :  { %519 = vperm.xlu2 %777, %v1074_v14   ;;  %v336_v45 = vpop.permute.xlu2 %335 }
  0xed   :  { %v282_v49 = vadd.f32 %v281_v44, %v275_v47  ;;  %v439_v39 = vpop.permute.xlu0 %438 }
  0xef   :  { %v289_v54 = vadd.f32 %v288_v34, %v282_v49 }
  0xf3   :  { %778 = vset.pattern.permute.xlu1 %v849_v8  ;;  %v292_v52 = vpop.permute.xlu1 %291 }
  0xf4   :  { %v295_v55 = vmul.f32 %v294_v51, %v292_v52  ;;  %528 = vperm.xlu1 %778, %v1091_v23   ;;  %779 = vset.pattern.permute.xlu2 %v849_v8 }
  0xf5   :  { %532 = vperm.xlu2 %779, %v1074_v14   ;;  %v361_v28 = vpop.permute.xlu2 %360  ;;  %v380_v43 = vpop.permute.xlu0 %379 }
  0xf6   :  { %v296_v32 = vadd.f32 %v295_v55, %v289_v54 }
  0xf8   :  { %v303_v57 = vadd.f32 %v302_v56, %v296_v32 }
  0xfa   :  { %805 = vtanh.f32 %v303_v57 }
  0xfc   :  { %782 = vset.pattern.permute.xlu1 %v850_v11  ;;  %v315_v59 = vpop.permute.xlu1 %314 }
  0xfd   :  { %545 = vperm.xlu1 %782, %v1074_v14   ;;  %783 = vset.pattern.permute.xlu2 %v845_v3  ;;  %v416_v55 = vpop.permute.xlu0 %415 }
  0xfe   :  { %561 = vperm.xlu2 %783, %v557_v58   ;;  %v373_v23 = vpop.permute.xlu2 %372 }
 0x100   :  { %v806_v60 = vpop.eup %805 }
 0x101   :  { %v317_v61 = vperm.slane %v806_v60, 0  ;;  %v324_v25 = vperm.slane %v806_v60, 1  ;;  %v331_v0 = vperm.slane %v806_v60, 2  ;;  %v338_v4 = vperm.slane %v806_v60, 3 }
 0x102   :  { %v345_v20 = vperm.slane %v806_v60, 4  ;;  %v352_v31 = vperm.slane %v806_v60, 5 }
 0x103   :  { %v318_v62 = vmul.f32 %v317_v61, %v315_v59  ;;  %v325_v14 = vmul.f32 %v324_v25, %v322_v38  ;;  %v339_v19 = vmul.f32 %v338_v4, %v336_v45 }
 0x104   :  { %v346_v29 = vmul.f32 %v345_v20, %v343_v24 }
 0x105   :  { %v319_v7 = vadd.f32 %v318_v62, %v1085_v22  ;;  %784 = vset.pattern.permute.xlu1 %v845_v3  ;;  %v329_v9 = vpop.permute.xlu1 %328 }
 0x106   :  { %v332_v12 = vmul.f32 %v331_v0, %v329_v9  ;;  %566 = vperm.xlu1 %784, %v558_v63   ;;  %571 = vperm.xlu2 %783, %v1147_v10  }
 0x107   :  { %v326_v17 = vadd.f32 %v325_v14, %v319_v7  ;;  %v397_v18 = vpop.permute.xlu2 %396 }
 0x109   :  { %v333_v21 = vadd.f32 %v332_v12, %v326_v17 }
 0x10b   :  { %v340_v27 = vadd.f32 %v339_v19, %v333_v21 }
 0x10d   :  { %v347_v3 = vadd.f32 %v346_v29, %v340_v27 }
 0x10e   :  { %785 = vset.pattern.permute.xlu1 %v844_v2  ;;  %v350_v22 = vpop.permute.xlu1 %349  ;;  %786 = vset.pattern.permute.xlu2 %v844_v2 }
 0x10f   :  { %v353_v35 = vmul.f32 %v352_v31, %v350_v22  ;;  %585 = vperm.xlu1 %785, %v1147_v10   ;;  %589 = vperm.xlu2 %786, %v1129_v48  }
 0x110   :  { %v409_v38 = vpop.permute.xlu2 %408 }
 0x111   :  { %v354_v37 = vadd.f32 %v353_v35, %v347_v3 }
 0x113   :  { %807 = vtanh.f32 %v354_v37  ;;  %v507_v37 = vpop.permute.xlu0 %506 }
 0x117   :  { %787 = vset.pattern.permute.xlu1 %v843_v1  ;;  %v366_v16 = vpop.permute.xlu1 %365  ;;  %788 = vset.pattern.permute.xlu2 %v843_v1 }
 0x118   :  { %598 = vperm.xlu1 %787, %v1147_v10   ;;  %602 = vperm.xlu2 %788, %v1129_v48  }
 0x119   :  { %v808_v2 = vpop.eup %807  ;;  %v432_v30 = vpop.permute.xlu2 %431 }
 0x11a   :  { %v368_v36 = vperm.slane %v808_v2, 0  ;;  %v375_v40 = vperm.slane %v808_v2, 1  ;;  %v382_v42 = vperm.slane %v808_v2, 2  ;;  %v389_v44 = vperm.slane %v808_v2, 3 }
 0x11c   :  { %v369_v41 = vmul.f32 %v368_v36, %v366_v16  ;;  %v376_v26 = vmul.f32 %v375_v40, %v373_v23  ;;  %v383_v46 = vmul.f32 %v382_v42, %v380_v43  ;;  %v542_v43 = vpop.permute.xlu0 %541 }
 0x11e   :  { %v370_v33 = vadd.f32 %v369_v41, %v361_v28 }
 0x120   :  { %v377_v45 = vadd.f32 %v376_v26, %v370_v33  ;;  %790 = vset.pattern.permute.xlu1 %v847_v6  ;;  %v387_v47 = vpop.permute.xlu1 %386  ;;  %791 = vset.pattern.permute.xlu2 %v849_v8 }
 0x121   :  { %v390_v1 = vmul.f32 %v389_v44, %v387_v47  ;;  %615 = vperm.xlu1 %790, %v1129_v48   ;;  %624 = vperm.xlu2 %791, %v1147_v10  }
 0x122   :  { %v384_v49 = vadd.f32 %v383_v46, %v377_v45  ;;  %v453_v34 = vpop.permute.xlu2 %452 }
 0x124   :  { %v391_v50 = vadd.f32 %v390_v1, %v384_v49  ;;  %v476_v46 = vpop.permute.xlu0 %475 }
 0x126   :  { %v411_v51 = vperm.slane %v391_v50, 1  ;;  %v404_v52 = vperm.slane %v391_v50, 0  ;;  %v418_v54 = vperm.slane %v391_v50, 2 }
 0x128   :  { %v412_v56 = vmul.f32 %v411_v51, %v409_v38  ;;  %v419_v32 = vmul.f32 %v418_v54, %v416_v55 }
 0x129   :  { %792 = vset.pattern.permute.xlu1 %v849_v8  ;;  %v402_v53 = vpop.permute.xlu1 %401  ;;  %793 = vset.pattern.permute.xlu2 %v850_v11 }
 0x12a   :  { %v405_v6 = vmul.f32 %v404_v52, %v402_v53  ;;  %628 = vperm.xlu1 %792, %v1129_v48   ;;  %637 = vperm.xlu2 %793, %v1147_v10  }
 0x12b   :  { %v471_v59 = vpop.permute.xlu2 %470 }
 0x12c   :  { %v406_v28 = vadd.f32 %v405_v6, %v397_v18 }
 0x12e   :  { %v413_v57 = vadd.f32 %v412_v56, %v406_v28 }
 0x130   :  { %v420_v58 = vadd.f32 %v419_v32, %v413_v57 }
 0x131   :  { %v427_v23 = vpop.permute.xlu1 %426 }
 0x132   :  { %809 = vtanh.f32 %v420_v58  ;;  %795 = vset.pattern.permute.xlu1 %v851_v13  ;;  %796 = vset.pattern.permute.xlu2 %v851_v13 }
 0x133   :  { %650 = vperm.xlu1 %795, %v1147_v10   ;;  %654 = vperm.xlu2 %796, %v1129_v48  }
 0x134   :  { %v490_v61 = vpop.permute.xlu2 %489 }
 0x138   :  { %v810_v8 = vpop.eup %809 }
 0x139   :  { %v434_v11 = vperm.slane %v810_v8, 0  ;;  %v441_v60 = vperm.slane %v810_v8, 1  ;;  %v448_v63 = vperm.slane %v810_v8, 2  ;;  %v455_v13 = vperm.slane %v810_v8, 3 }
 0x13a   :  { %v446_v25 = vpop.permute.xlu1 %445 }
 0x13b   :  { %v435_v62 = vmul.f32 %v434_v11, %v432_v30  ;;  %797 = vset.pattern.permute.xlu1 %v846_v5  ;;  %798 = vset.pattern.permute.xlu2 %v846_v5  ;;  %v442_v4 = vmul.f32 %v441_v60, %v439_v39  ;;  %v449_v9 = vmul.f32 %v448_v63, %v446_v25  ;;  %v577_v11 = vpop.permute.xlu0 %576 }
 0x13c   :  { %663 = vperm.xlu1 %797, %v1147_v10   ;;  %667 = vperm.xlu2 %798, %v1129_v48   ;;  %v456_v12 = vmul.f32 %v455_v13, %v453_v34 }
 0x13d   :  { %v436_v0 = vadd.f32 %v435_v62, %v427_v23  ;;  %v503_v19 = vpop.permute.xlu2 %502 }
 0x13f   :  { %v443_v7 = vadd.f32 %v442_v4, %v436_v0 }
 0x141   :  { %v450_v14 = vadd.f32 %v449_v9, %v443_v7 }
 0x143   :  { %v457_v17 = vadd.f32 %v456_v12, %v450_v14  ;;  %v466_v18 = vpop.permute.xlu1 %465  ;;  %v612_v4 = vpop.permute.xlu0 %611 }
 0x144   :  { %800 = vset.pattern.permute.xlu1 %v852_v15 }
 0x145   :  { %811 = vtanh.f32 %v457_v17  ;;  %680 = vperm.xlu1 %800, %v1129_v48  }
 0x146   :  { %v520_v21 = vpop.permute.xlu2 %519 }
 0x14b   :  { %v812_v5 = vpop.eup %811  ;;  %v481_v20 = vpop.permute.xlu1 %480 }
 0x14c   :  { %v483_v10 = vperm.slane %v812_v5, 0  ;;  %v509_v29 = vperm.slane %v812_v5, 2  ;;  %v496_v31 = vperm.slane %v812_v5, 1  ;;  %v522_v3 = vperm.slane %v812_v5, 3 }
 0x14d   :  { %v535_v15 = vperm.slane %v812_v5, 4  ;;  %v548_v26 = vperm.slane %v812_v5, 5 }
 0x14e   :  { %v485_v24 = vmul.f32 %v483_v10, %v481_v20  ;;  %v511_v38 = vmul.f32 %v509_v29, %v507_v37  ;;  %v524_v2 = vmul.f32 %v522_v3, %v520_v21  ;;  %v484_v1 = vmul.f32 %v483_v10, %v476_v46 }
 0x14f   :  { %v533_v16 = vpop.permute.xlu2 %532  ;;  %v497_v51 = vmul.f32 %v496_v31, %v490_v61  ;;  %v510_v53 = vmul.f32 %v509_v29, %v503_v19  ;;  %v549_v58 = vmul.f32 %v548_v26, %v542_v43 }
 0x150   :  { %v487_v27 = vadd.f32 %v485_v24, %v471_v59  ;;  %v537_v40 = vmul.f32 %v535_v15, %v533_v16  ;;  %v486_v50 = vadd.f32 %v484_v1, %v466_v18 }
 0x152   :  { %v499_v52 = vadd.f32 %v497_v51, %v486_v50 }
 0x154   :  { %v494_v22 = vpop.permute.xlu1 %493  ;;  %v512_v6 = vadd.f32 %v510_v53, %v499_v52 }
 0x155   :  { %v498_v35 = vmul.f32 %v496_v31, %v494_v22 }
 0x157   :  { %v500_v39 = vadd.f32 %v498_v35, %v487_v27  ;;  %v642_v27 = vpop.permute.xlu0 %641 }
 0x158   :  { %v562_v33 = vpop.permute.xlu2 %561 }
 0x159   :  { %v513_v36 = vadd.f32 %v511_v38, %v500_v39 }
 0x15b   :  { %v526_v48 = vadd.f32 %v524_v2, %v513_v36 }
 0x15d   :  { %v516_v41 = vpop.permute.xlu1 %515  ;;  %v539_v42 = vadd.f32 %v537_v40, %v526_v48 }
 0x15e   :  { %v523_v54 = vmul.f32 %v522_v3, %v516_v41 }
 0x15f   :  { %v677_v46 = vpop.permute.xlu0 %676 }
 0x160   :  { %v572_v49 = vpop.permute.xlu2 %571  ;;  %v525_v32 = vadd.f32 %v523_v54, %v512_v6 }
 0x166   :  { %v529_v30 = vpop.permute.xlu1 %528 }
 0x167   :  { %v536_v55 = vmul.f32 %v535_v15, %v529_v30 }
 0x169   :  { %v590_v28 = vpop.permute.xlu2 %589  ;;  %v538_v57 = vadd.f32 %v536_v55, %v525_v32 }
 0x16b   :  { %v551_v59 = vadd.f32 %v549_v58, %v538_v57 }
 0x16d   :  { %813 = vtanh.f32 %v551_v59 }
 0x16f   :  { %v546_v44 = vpop.permute.xlu1 %545 }
 0x170   :  { %v550_v45 = vmul.f32 %v548_v26, %v546_v44 }
 0x172   :  { %v552_v47 = vadd.f32 %v550_v45, %v539_v42  ;;  %v603_v8 = vpop.permute.xlu2 %602 }
 0x173   :  { %v814_v60 = vpop.eup %813 }
 0x174   :  { %v579_v62 = vperm.slane %v814_v60, 0  ;;  %v592_v61 = vperm.slane %v814_v60, 1  ;;  %v605_v13 = vperm.slane %v814_v60, 2  ;;  %v618_v18 = vperm.slane %v814_v60, 3 }
 0x175   :  { %815 = vtanh.f32 %v552_v47  ;;  %v631_v31 = vperm.slane %v814_v60, 4  ;;  %v644_v2 = vperm.slane %v814_v60, 5  ;;  %v657_v36 = vperm.slane %v814_v60, 6 }
 0x176   :  { %v580_v0 = vmul.f32 %v579_v62, %v572_v49  ;;  %v581_v9 = vmul.f32 %v579_v62, %v577_v11  ;;  %v594_v21 = vmul.f32 %v592_v61, %v590_v28  ;;  %v619_v24 = vmul.f32 %v618_v18, %v612_v4 }
 0x177   :  { %v607_v35 = vmul.f32 %v605_v13, %v603_v8  ;;  %v670_v26 = vperm.slane %v814_v60, 7  ;;  %v646_v45 = vmul.f32 %v644_v2, %v642_v27 }
 0x178   :  { %v567_v34 = vpop.permute.xlu1 %566  ;;  %v582_v12 = vadd.f32 %v580_v0, %v562_v33 }
 0x179   :  { %v583_v20 = vadd.f32 %v581_v9, %v567_v34 }
 0x17b   :  { %v625_v63 = vpop.permute.xlu2 %624  ;;  %v596_v29 = vadd.f32 %v594_v21, %v583_v20  ;;  %v816_v48 = vpop.eup %815 }
 0x17c   :  { %v632_v38 = vmul.f32 %v631_v31, %v625_v63  ;;  %v683_v33 = vperm.slane %v816_v48, 0 }
 0x17d   :  { %v609_v39 = vadd.f32 %v607_v35, %v596_v29 }
 0x17e   :  { %v684_v34 = vmul.f32 %v683_v33, %v677_v46 }
 0x181   :  { %v586_v56 = vpop.permute.xlu1 %585 }
 0x182   :  { %v593_v7 = vmul.f32 %v592_v61, %v586_v56 }
 0x184   :  { %v595_v19 = vadd.f32 %v593_v7, %v582_v12  ;;  %v638_v5 = vpop.permute.xlu2 %637 }
 0x185   :  { %v645_v42 = vmul.f32 %v644_v2, %v638_v5 }
 0x18a   :  { %v599_v23 = vpop.permute.xlu1 %598 }
 0x18b   :  { %v606_v17 = vmul.f32 %v605_v13, %v599_v23 }
 0x18d   :  { %v608_v10 = vadd.f32 %v606_v17, %v595_v19  ;;  %v655_v15 = vpop.permute.xlu2 %654 }
 0x18e   :  { %v659_v52 = vmul.f32 %v657_v36, %v655_v15 }
 0x18f   :  { %v621_v22 = vadd.f32 %v619_v24, %v608_v10 }
 0x191   :  { %v634_v40 = vadd.f32 %v632_v38, %v621_v22 }
 0x193   :  { %v616_v25 = vpop.permute.xlu1 %615  ;;  %v647_v44 = vadd.f32 %v645_v42, %v634_v40 }
 0x194   :  { %v620_v37 = vmul.f32 %v618_v18, %v616_v25 }
 0x196   :  { %v622_v41 = vadd.f32 %v620_v37, %v609_v39  ;;  %v668_v53 = vpop.permute.xlu2 %667 }
 0x197   :  { %v672_v55 = vmul.f32 %v670_v26, %v668_v53 }
 0x19c   :  { %v629_v14 = vpop.permute.xlu1 %628 }
 0x19d   :  { %v633_v16 = vmul.f32 %v631_v31, %v629_v14 }
 0x19f   :  { %v635_v43 = vadd.f32 %v633_v16, %v622_v41 }
 0x1a1   :  { %v648_v50 = vadd.f32 %v646_v45, %v635_v43 }
 0x1a3   :  { %v661_v6 = vadd.f32 %v659_v52, %v648_v50 }
 0x1a5   :  { %v651_v3 = vpop.permute.xlu1 %650  ;;  %v674_v56 = vadd.f32 %v672_v55, %v661_v6 }
 0x1a6   :  { %v658_v30 = vmul.f32 %v657_v36, %v651_v3 }
 0x1a8   :  { %v660_v1 = vadd.f32 %v658_v30, %v647_v44 }
 0x1ae   :  { %v664_v47 = vpop.permute.xlu1 %663 }
 0x1af   :  { %v671_v49 = vmul.f32 %v670_v26, %v664_v47 }
 0x1b1   :  { %v673_v51 = vadd.f32 %v671_v49, %v660_v1 }
 0x1b3   :  { %v686_v54 = vadd.f32 %v684_v34, %v673_v51 }
 0x1b5   :  { %688 = vst [vmem:[#allocation2] sm:$0xff] %v686_v54 }
 0x1b7   :  { %v681_v28 = vpop.permute.xlu1 %680 }
 0x1b8   :  { %v685_v32 = vmul.f32 %v683_v33, %v681_v28 }
 0x1ba   :  { %v687_v57 = vadd.f32 %v685_v32, %v674_v56 }
 0x1bc   :  { %689 = vst [vmem:[#allocation2 + $0x8] sm:$0xf] %v687_v57 }
 0x1bd   :  { %702 = dma.vmem_to_hbm [thread:$0]  %s695_s11, 256, %s697_s7, [#allocation3], %s856_s27, %s856_s27, %s857_s28  }
 0x1be   :  { %841 = dma.done.wait [#allocation3], 256  }
 0x1bf   :  { %842 = vsyncadd [#allocation3], 4294967040 }
 0x1c0   :  { %707 = vsyncpa [#allocation3], 1 }

</bundles_post_ra>
